<compile_context>
chip_gen: v6e
topology: v6e:2x2x1
jax: 0.10.0
libtpu: 0.0.40
codegen_flags: <defaults>
</compile_context>

<pallas_src>
import functools

import jax
import jax.numpy as jnp
from jax.experimental import pallas as pl
from jax.experimental.pallas import tpu as pltpu


# ----------------------------- tiling helpers -----------------------------

def _row_tile(M, max_tile=256):
    """Largest row tile <= max_tile that evenly divides M (multiple of 8 when tiled)."""
    if M <= max_tile:
        return M
    t = max_tile - (max_tile % 8)
    while t >= 8:
        if M % t == 0:
            return t
        t -= 8
    return M


def _k_tile(K, max_tile=1024):
    """Contraction tile: full K when small, else a multiple of 128 that divides K."""
    if K <= max_tile:
        return K
    t = max_tile - (max_tile % 128)
    while t >= 128:
        if K % t == 0:
            return t
        t -= 128
    return K


# ----------------------------- in-kernel math helpers -----------------------------

def _gelu_f32(y):
    # BERT's tanh-approximate GELU, evaluated in f32.
    return 0.5 * y * (1.0 + jnp.tanh(0.7978845608028654 * (y + 0.044715 * y * y * y)))


def _apply_activation(y, activation):
    if activation == "gelu":
        return _gelu_f32(y)
    if activation == "tanh":
        return jnp.tanh(y)
    return y


def _layernorm_f32(y, gamma, beta, eps):
    mean = jnp.mean(y, axis=-1, keepdims=True)
    yc = y - mean
    var = jnp.mean(yc * yc, axis=-1, keepdims=True)
    inv = jax.lax.rsqrt(var + eps)
    return yc * inv * gamma + beta


# ----------------------------- linear kernels -----------------------------

def _linear_single_kernel(x_ref, w_ref, b_ref, o_ref, *, activation):
    """y = act(x @ w + b); whole contraction in one step (no accumulator)."""
    y = jnp.dot(x_ref[...], w_ref[...], preferred_element_type=jnp.float32) + b_ref[...]
    o_ref[...] = _apply_activation(y, activation).astype(o_ref.dtype)


def _linear_acc_kernel(x_ref, w_ref, b_ref, o_ref, acc_ref, *, activation):
    """y = act(x @ w + b); K-tiled with f32 VMEM accumulator (P3)."""
    @pl.when(pl.program_id(1) == 0)
    def _():
        acc_ref[...] = jnp.zeros_like(acc_ref)

    acc_ref[...] += jnp.dot(x_ref[...], w_ref[...], preferred_element_type=jnp.float32)

    @pl.when(pl.program_id(1) == pl.num_programs(1) - 1)
    def _():
        y = acc_ref[...] + b_ref[...]
        o_ref[...] = _apply_activation(y, activation).astype(o_ref.dtype)


def linear(x2d, w, b, activation="none", out_dtype=jnp.bfloat16):
    """x2d: (M, K) bf16, w: (K, N) bf16, b: (N,) f32."""
    M, K = x2d.shape
    N = w.shape[1]
    TM = _row_tile(M)
    TK = _k_tile(K)
    nk = K // TK

    if nk == 1:
        kernel = functools.partial(_linear_single_kernel, activation=activation)
        grid = (M // TM,)
        in_specs = [
            pl.BlockSpec((TM, K), lambda i: (i, 0)),
            pl.BlockSpec((K, N), lambda i: (0, 0)),
            pl.BlockSpec((1, N), lambda i: (0, 0)),
        ]
        out_specs = pl.BlockSpec((TM, N), lambda i: (i, 0))
        scratch = []
        sem = ("parallel",)
    else:
        kernel = functools.partial(_linear_acc_kernel, activation=activation)
        grid = (M // TM, nk)
        in_specs = [
            pl.BlockSpec((TM, TK), lambda i, k: (i, k)),
            pl.BlockSpec((TK, N), lambda i, k: (k, 0)),
            pl.BlockSpec((1, N), lambda i, k: (0, 0)),
        ]
        out_specs = pl.BlockSpec((TM, N), lambda i, k: (i, 0))
        scratch = [pltpu.VMEM((TM, N), jnp.float32)]
        sem = ("parallel", "arbitrary")

    return pl.pallas_call(
        kernel,
        out_shape=jax.ShapeDtypeStruct((M, N), out_dtype),
        grid=grid,
        in_specs=in_specs,
        out_specs=out_specs,
        scratch_shapes=scratch,
        compiler_params=pltpu.CompilerParams(dimension_semantics=sem),
    )(x2d, w, b.reshape(1, N))


def _linear_res_ln_single_kernel(x_ref, w_ref, b_ref, r_ref, g_ref, bb_ref, o_ref, *, eps):
    """out = LayerNorm(x @ w + b + residual); whole contraction in one step."""
    y = (jnp.dot(x_ref[...], w_ref[...], preferred_element_type=jnp.float32)
         + b_ref[...] + r_ref[...].astype(jnp.float32))
    o_ref[...] = _layernorm_f32(y, g_ref[...], bb_ref[...], eps).astype(o_ref.dtype)


def _linear_res_ln_acc_kernel(x_ref, w_ref, b_ref, r_ref, g_ref, bb_ref, o_ref, acc_ref,
                              *, eps):
    """out = LayerNorm(x @ w + b + residual); K-tiled with f32 VMEM accumulator."""
    @pl.when(pl.program_id(1) == 0)
    def _():
        acc_ref[...] = jnp.zeros_like(acc_ref)

    acc_ref[...] += jnp.dot(x_ref[...], w_ref[...], preferred_element_type=jnp.float32)

    @pl.when(pl.program_id(1) == pl.num_programs(1) - 1)
    def _():
        y = acc_ref[...] + b_ref[...] + r_ref[...].astype(jnp.float32)
        o_ref[...] = _layernorm_f32(y, g_ref[...], bb_ref[...], eps).astype(o_ref.dtype)


def linear_residual_layernorm(x2d, w, b, res2d, gamma, beta, eps=1e-12,
                              out_dtype=jnp.bfloat16):
    """LayerNorm(x2d @ w + b + res2d).  x2d: (M, K) bf16, w: (K, N) bf16, res2d: (M, N) bf16."""
    M, K = x2d.shape
    N = w.shape[1]
    TM = _row_tile(M)
    TK = _k_tile(K)
    nk = K // TK

    if nk == 1:
        kernel = functools.partial(_linear_res_ln_single_kernel, eps=eps)
        grid = (M // TM,)
        in_specs = [
            pl.BlockSpec((TM, K), lambda i: (i, 0)),
            pl.BlockSpec((K, N), lambda i: (0, 0)),
            pl.BlockSpec((1, N), lambda i: (0, 0)),
            pl.BlockSpec((TM, N), lambda i: (i, 0)),
            pl.BlockSpec((1, N), lambda i: (0, 0)),
            pl.BlockSpec((1, N), lambda i: (0, 0)),
        ]
        out_specs = pl.BlockSpec((TM, N), lambda i: (i, 0))
        scratch = []
        sem = ("parallel",)
    else:
        kernel = functools.partial(_linear_res_ln_acc_kernel, eps=eps)
        grid = (M // TM, nk)
        in_specs = [
            pl.BlockSpec((TM, TK), lambda i, k: (i, k)),
            pl.BlockSpec((TK, N), lambda i, k: (k, 0)),
            pl.BlockSpec((1, N), lambda i, k: (0, 0)),
            pl.BlockSpec((TM, N), lambda i, k: (i, 0)),
            pl.BlockSpec((1, N), lambda i, k: (0, 0)),
            pl.BlockSpec((1, N), lambda i, k: (0, 0)),
        ]
        out_specs = pl.BlockSpec((TM, N), lambda i, k: (i, 0))
        scratch = [pltpu.VMEM((TM, N), jnp.float32)]
        sem = ("parallel", "arbitrary")

    return pl.pallas_call(
        kernel,
        out_shape=jax.ShapeDtypeStruct((M, N), out_dtype),
        grid=grid,
        in_specs=in_specs,
        out_specs=out_specs,
        scratch_shapes=scratch,
        compiler_params=pltpu.CompilerParams(dimension_semantics=sem),
    )(x2d, w, b.reshape(1, N), res2d, gamma.reshape(1, N), beta.reshape(1, N))


# ----------------------------- layernorm kernel -----------------------------

def _layernorm_kernel(x_ref, g_ref, b_ref, o_ref, *, eps):
    x = x_ref[...].astype(jnp.float32)
    o_ref[...] = _layernorm_f32(x, g_ref[...], b_ref[...], eps).astype(o_ref.dtype)


def layernorm(x2d, gamma, beta, eps=1e-12, out_dtype=jnp.bfloat16):
    """LayerNorm over the last axis (embedding layer; no residual slab)."""
    M, D = x2d.shape
    TM = _row_tile(M)
    return pl.pallas_call(
        functools.partial(_layernorm_kernel, eps=eps),
        out_shape=jax.ShapeDtypeStruct((M, D), out_dtype),
        grid=(M // TM,),
        in_specs=[
            pl.BlockSpec((TM, D), lambda i: (i, 0)),
            pl.BlockSpec((1, D), lambda i: (0, 0)),
            pl.BlockSpec((1, D), lambda i: (0, 0)),
        ],
        out_specs=pl.BlockSpec((TM, D), lambda i: (i, 0)),
        compiler_params=pltpu.CompilerParams(dimension_semantics=("parallel",)),
    )(x2d, gamma.reshape(1, D), beta.reshape(1, D))


# ----------------------------- attention kernel -----------------------------

def _attention_kernel(qkv_ref, mrow_ref, mcol_ref, o_ref, *, scale, num_heads, dh, D):
    """Fused masked-softmax attention for one batch element, all heads.

    qkv_ref : (1, S, 3D) bf16 fused QKV rows.
    mrow_ref: (1, S, 1)  f32 pad indicator per query row (1.0 = real token).
    mcol_ref: (1, 1, S)  f32 pad indicator per key column.
    o_ref   : (1, S, D)  bf16 context in (S, H*dh) interleaved layout (single full-width store).
    """
    qkv = qkv_ref[0]                                   # (S, 3D)
    # Rebuild the (S, S) product mask in-VMEM (same semantics as torch bmm mask == 0).
    pair = mrow_ref[0] * mcol_ref[0]                   # (S, 1) * (1, S) -> (S, S)
    masked = pair == 0.0                               # True where either token is padding

    ctx_heads = []
    for h in range(num_heads):
        q = qkv[:, h * dh:(h + 1) * dh]
        k = qkv[:, D + h * dh:D + (h + 1) * dh]
        v = qkv[:, 2 * D + h * dh:2 * D + (h + 1) * dh]
        # s = q @ k.T  (contract last dims; avoids materializing a transpose)
        s = jax.lax.dot_general(q, k, (((1,), (1,)), ((), ())),
                                preferred_element_type=jnp.float32) * scale
        s = jnp.where(masked, -1e9, s)
        s_max = jnp.max(s, axis=-1, keepdims=True)
        p = jnp.exp(s - s_max)
        inv = pl.reciprocal(jnp.sum(p, axis=-1, keepdims=True), approx=True)
        p = (p * inv).astype(qkv.dtype)
        ctx_heads.append(jnp.dot(p, v, preferred_element_type=jnp.float32))

    ctx = jnp.concatenate(ctx_heads, axis=-1)          # (S, D) f32, lane-dense
    o_ref[0] = ctx.astype(o_ref.dtype)


def attention(qkv, mrow, mcol, scale, num_heads):
    """qkv: (B, S, 3D) bf16; mrow: (B, S, 1) f32; mcol: (B, 1, S) f32. -> (B, S, D) bf16."""
    B, S, threeD = qkv.shape
    D = threeD // 3
    dh = D // num_heads
    return pl.pallas_call(
        functools.partial(_attention_kernel, scale=scale,
                          num_heads=num_heads, dh=dh, D=D),
        out_shape=jax.ShapeDtypeStruct((B, S, D), jnp.bfloat16),
        grid=(B,),
        in_specs=[
            pl.BlockSpec((1, S, 3 * D), lambda b: (b, 0, 0)),
            pl.BlockSpec((1, S, 1), lambda b: (b, 0, 0)),
            pl.BlockSpec((1, 1, S), lambda b: (b, 0, 0)),
        ],
        out_specs=pl.BlockSpec((1, S, D), lambda b: (b, 0, 0)),
        compiler_params=pltpu.CompilerParams(dimension_semantics=("parallel",)),
    )(qkv, mrow, mcol)


# ----------------------------- parameter init -----------------------------

def init_params(key, cfg):
    D = cfg["dim_model"]
    FF = cfg["dim_ff"]
    V = cfg["vocab_size"]
    std = cfg["init_range"]
    keys = iter(jax.random.split(key, 128))

    def tn(shape):
        return (std * jax.random.truncated_normal(next(keys), -2.0, 2.0, shape)
                ).astype(jnp.float32)

    bf16 = jnp.bfloat16
    params = {
        "tok_emb": tn((V, D)).at[cfg["pad_idx"]].set(0.0),
        "seg_emb": tn((cfg["type_vocab_size"], D)),
        "pos_emb": tn((cfg["max_position"], D)),
        "emb_ln_g": jnp.ones((D,), jnp.float32),
        "emb_ln_b": jnp.zeros((D,), jnp.float32),
        "pool_w": tn((D, D)).astype(bf16),
        "pool_b": jnp.zeros((D,), jnp.float32),
        "layers": [],
    }
    for _ in range(cfg["num_hidden_layers"]):
        params["layers"].append({
            # fused Q/K/V projection weight: (D, 3D)
            "wqkv": jnp.concatenate([tn((D, D)), tn((D, D)), tn((D, D))],
                                    axis=1).astype(bf16),
            "bqkv": jnp.zeros((3 * D,), jnp.float32),
            "wo": tn((D, D)).astype(bf16), "bo": jnp.zeros((D,), jnp.float32),
            "ln1_g": jnp.ones((D,), jnp.float32),
            "ln1_b": jnp.zeros((D,), jnp.float32),
            "w1": tn((D, FF)).astype(bf16), "b1": jnp.zeros((FF,), jnp.float32),
            "w2": tn((FF, D)).astype(bf16), "b2": jnp.zeros((D,), jnp.float32),
            "ln2_g": jnp.ones((D,), jnp.float32),
            "ln2_b": jnp.zeros((D,), jnp.float32),
        })
    return params


# ----------------------------- forward pass -----------------------------

def bert_forward(params, tokens, segments, cfg):
    B, S = tokens.shape
    D = cfg["dim_model"]
    H = cfg["num_attention_heads"]
    dh = D // H

    # pad indicator (matches torch mask: bmm product == 0 => masked); only (B, S) is
    # materialized — the (S, S) product mask is rebuilt inside the attention kernel.
    mf = (tokens != cfg["pad_idx"]).astype(jnp.float32)          # (B, S)
    mrow = mf[:, :, None]                                        # (B, S, 1)
    mcol = mf[:, None, :]                                        # (B, 1, S)

    # embedding layer: gathers (glue) + layernorm kernel
    tok_e = params["tok_emb"][tokens]                            # (B, S, D)
    seg_e = params["seg_emb"][segments]                          # (B, S, D)
    pos_e = params["pos_emb"][jnp.arange(S)][None, :, :]         # (1, S, D)
    emb = (tok_e + seg_e + pos_e).reshape(B * S, D)
    x = layernorm(emb, params["emb_ln_g"], params["emb_ln_b"])   # (B*S, D) bf16

    scale = 1.0 / float(dh) ** 0.5

    for lp in params["layers"]:
        # multi-head self-attention: fused QKV projection, per-batch fused attention,
        # output projection with fused residual + LayerNorm epilogue.
        qkv = linear(x, lp["wqkv"], lp["bqkv"])                  # (B*S, 3D) bf16
        ctx = attention(qkv.reshape(B, S, 3 * D), mrow, mcol, scale, H)  # (B, S, D)
        ctx = ctx.reshape(B * S, D)
        x = linear_residual_layernorm(ctx, lp["wo"], lp["bo"], x,
                                      lp["ln1_g"], lp["ln1_b"])
        # feed-forward with fused GELU, then fused residual + LayerNorm epilogue.
        h = linear(x, lp["w1"], lp["b1"], activation="gelu")
        x = linear_residual_layernorm(h, lp["w2"], lp["b2"], x,
                                      lp["ln2_g"], lp["ln2_b"])

    x3 = x.reshape(B, S, D)
    cls = x3[:, 0, :]                                            # (B, D) bf16
    pooled = linear(cls, params["pool_w"], params["pool_b"],
                    activation="tanh", out_dtype=jnp.float32)
    return x3.astype(jnp.float32), pooled


# ----------------------------------- main -----------------------------------

if __name__ == "__main__":
    cfg = dict(
        vocab_size=50,
        type_vocab_size=2,
        max_position=16,
        dim_model=32,
        dim_ff=64,
        num_attention_heads=4,
        num_hidden_layers=2,
        pad_idx=0,
        init_range=0.02,
    )
    B, S = 2, 8

    key = jax.random.PRNGKey(0)
    kp, kt, ks = jax.random.split(key, 3)

    params = init_params(kp, cfg)

    tokens = jax.random.randint(kt, (B, S), 1, cfg["vocab_size"], dtype=jnp.int32)
    tokens = tokens.at[0, 6:].set(cfg["pad_idx"])                # exercise padding mask
    segments = jnp.concatenate(
        [jnp.zeros((B, S // 2), jnp.int32), jnp.ones((B, S // 2), jnp.int32)], axis=1)

    fwd = jax.jit(lambda p, t, s: bert_forward(p, t, s, cfg))
    x_out, pooled = fwd(params, tokens, segments)
    jax.block_until_ready((x_out, pooled))

    assert x_out.shape == (B, S, cfg["dim_model"])
    assert pooled.shape == (B, cfg["dim_model"])
    assert bool(jnp.all(jnp.isfinite(x_out))) and bool(jnp.all(jnp.isfinite(pooled)))
    print("KERNEL_OK")
</pallas_src>

<mosaic_0001>
module attributes {stable_mosaic.version = 11 : i64} {
  func.func @_linear_single_kernel(%arg0: i32, %arg1: memref<16x32xbf16, #tpu.memory_space<vmem>>, %arg2: memref<32x96xbf16, #tpu.memory_space<vmem>>, %arg3: memref<1x96xf32, #tpu.memory_space<vmem>>, %arg4: memref<16x96xbf16, #tpu.memory_space<vmem>>) attributes {dimension_semantics = [#tpu.dimension_semantics<parallel>], iteration_bounds = array<i64: 1>, scalar_prefetch = 0 : i64, scratch_operands = 0 : i64, tpu.core_type = #tpu.core_type<tc>, window_params = [{transform_indices = @transform_0, window_bounds = array<i64: 16, 32>}, {pipeline_mode = #tpu.pipeline_mode<synchronous>, transform_indices = @transform_1, window_bounds = array<i64: 32, 96>}, {pipeline_mode = #tpu.pipeline_mode<synchronous>, transform_indices = @transform_2, window_bounds = array<i64: 1, 96>}, {transform_indices = @transform_3, window_bounds = array<i64: 16, 96>}]} {
    %c0 = arith.constant 0 : index
    %c0_0 = arith.constant 0 : index
    %0 = vector.load %arg1[%c0, %c0_0] : memref<16x32xbf16, #tpu.memory_space<vmem>>, vector<16x32xbf16>
    %c0_1 = arith.constant 0 : index
    %c0_2 = arith.constant 0 : index
    %1 = vector.load %arg2[%c0_1, %c0_2] : memref<32x96xbf16, #tpu.memory_space<vmem>>, vector<32x96xbf16>
    %cst = arith.constant dense<0.000000e+00> : vector<16x96xf32>
    %2 = tpu.matmul %0, %1, %cst {dimension_numbers = #tpu.dot_dimension_numbers<[1], [0], [0], [1], [0, 0, 1, 1], [], []>} : vector<16x32xbf16>, vector<32x96xbf16>, vector<16x96xf32> -> vector<16x96xf32>
    %c0_3 = arith.constant 0 : index
    %c0_4 = arith.constant 0 : index
    %3 = vector.load %arg3[%c0_3, %c0_4] : memref<1x96xf32, #tpu.memory_space<vmem>>, vector<1x96xf32>
    %4 = vector.broadcast %3 : vector<1x96xf32> to vector<16x96xf32>
    %5 = arith.addf %2, %4 : vector<16x96xf32>
    %6 = arith.truncf %5 : vector<16x96xf32> to vector<16x96xbf16>
    %c0_5 = arith.constant 0 : index
    %c0_6 = arith.constant 0 : index
    %7 = vector.load %arg4[%c0_5, %c0_6] : memref<16x96xbf16, #tpu.memory_space<vmem>>, vector<16x96xbf16>
    tpu.vector_store %arg4[%c0_5, %c0_6], %6 {strides = array<i32>} : memref<16x96xbf16, #tpu.memory_space<vmem>>, vector<16x96xbf16>,
    return
  }
  func.func @transform_0(%arg0: i32) -> (i32, i32) {
    %c0_i32 = arith.constant 0 : i32
    %c0_i32_0 = arith.constant 0 : i32
    return %arg0, %c0_i32 : i32, i32
  }
  func.func @transform_1(%arg0: i32) -> (i32, i32) {
    %c0_i32 = arith.constant 0 : i32
    %c0_i32_0 = arith.constant 0 : i32
    %c0_i32_1 = arith.constant 0 : i32
    return %c0_i32, %c0_i32_0 : i32, i32
  }
  func.func @transform_2(%arg0: i32) -> (i32, i32) {
    %c0_i32 = arith.constant 0 : i32
    %c0_i32_0 = arith.constant 0 : i32
    %c0_i32_1 = arith.constant 0 : i32
    return %c0_i32, %c0_i32_0 : i32, i32
  }
  func.func @transform_3(%arg0: i32) -> (i32, i32) {
    %c0_i32 = arith.constant 0 : i32
    %c0_i32_0 = arith.constant 0 : i32
    return %arg0, %c0_i32 : i32, i32
  }
}

module attributes {stable_mosaic.version = 11 : i64} {
  func.func @_layernorm_kernel(%arg0: i32, %arg1: memref<16x32xf32, #tpu.memory_space<vmem>>, %arg2: memref<1x32xf32, #tpu.memory_space<vmem>>, %arg3: memref<1x32xf32, #tpu.memory_space<vmem>>, %arg4: memref<16x32xbf16, #tpu.memory_space<vmem>>) attributes {dimension_semantics = [#tpu.dimension_semantics<parallel>], iteration_bounds = array<i64: 1>, scalar_prefetch = 0 : i64, scratch_operands = 0 : i64, tpu.core_type = #tpu.core_type<tc>, window_params = [{transform_indices = @transform_0, window_bounds = array<i64: 16, 32>}, {pipeline_mode = #tpu.pipeline_mode<synchronous>, transform_indices = @transform_1, window_bounds = array<i64: 1, 32>}, {pipeline_mode = #tpu.pipeline_mode<synchronous>, transform_indices = @transform_2, window_bounds = array<i64: 1, 32>}, {transform_indices = @transform_3, window_bounds = array<i64: 16, 32>}]} {
    %c0 = arith.constant 0 : index
    %c0_0 = arith.constant 0 : index
    %0 = vector.load %arg1[%c0, %c0_0] : memref<16x32xf32, #tpu.memory_space<vmem>>, vector<16x32xf32>
    %c0_1 = arith.constant 0 : index
    %c0_2 = arith.constant 0 : index
    %1 = vector.load %arg2[%c0_1, %c0_2] : memref<1x32xf32, #tpu.memory_space<vmem>>, vector<1x32xf32>
    %c0_3 = arith.constant 0 : index
    %c0_4 = arith.constant 0 : index
    %2 = vector.load %arg3[%c0_3, %c0_4] : memref<1x32xf32, #tpu.memory_space<vmem>>, vector<1x32xf32>
    %cst = arith.constant dense<0.000000e+00> : vector<16xf32>
    %3 = vector.multi_reduction <add>, %0, %cst [1] : vector<16x32xf32> to vector<16xf32>
    %4 = vector.shape_cast %3 : vector<16xf32> to vector<16x1xf32>
    %cst_5 = arith.constant 3.200000e+01 : f32
    %5 = vector.broadcast %cst_5 : f32 to vector<16x1xf32>
    %6 = arith.divf %4, %5 : vector<16x1xf32>
    %7 = vector.broadcast %6 : vector<16x1xf32> to vector<16x32xf32>
    %8 = arith.subf %0, %7 : vector<16x32xf32>
    %9 = arith.mulf %8, %8 : vector<16x32xf32>
    %cst_6 = arith.constant dense<0.000000e+00> : vector<16xf32>
    %10 = vector.multi_reduction <add>, %9, %cst_6 [1] : vector<16x32xf32> to vector<16xf32>
    %11 = vector.shape_cast %10 : vector<16xf32> to vector<16x1xf32>
    %cst_7 = arith.constant 3.200000e+01 : f32
    %12 = vector.broadcast %cst_7 : f32 to vector<16x1xf32>
    %13 = arith.divf %11, %12 : vector<16x1xf32>
    %cst_8 = arith.constant 9.99999996E-13 : f32
    %14 = vector.broadcast %cst_8 : f32 to vector<16x1xf32>
    %15 = arith.addf %13, %14 : vector<16x1xf32>
    %16 = math.rsqrt %15 : vector<16x1xf32>
    %17 = vector.broadcast %16 : vector<16x1xf32> to vector<16x32xf32>
    %18 = arith.mulf %8, %17 : vector<16x32xf32>
    %19 = vector.broadcast %1 : vector<1x32xf32> to vector<16x32xf32>
    %20 = arith.mulf %18, %19 : vector<16x32xf32>
    %21 = vector.broadcast %2 : vector<1x32xf32> to vector<16x32xf32>
    %22 = arith.addf %20, %21 : vector<16x32xf32>
    %23 = arith.truncf %22 : vector<16x32xf32> to vector<16x32xbf16>
    %c0_9 = arith.constant 0 : index
    %c0_10 = arith.constant 0 : index
    %24 = vector.load %arg4[%c0_9, %c0_10] : memref<16x32xbf16, #tpu.memory_space<vmem>>, vector<16x32xbf16>
    tpu.vector_store %arg4[%c0_9, %c0_10], %23 {strides = array<i32>} : memref<16x32xbf16, #tpu.memory_space<vmem>>, vector<16x32xbf16>,
    return
  }
  func.func @transform_0(%arg0: i32) -> (i32, i32) {
    %c0_i32 = arith.constant 0 : i32
    %c0_i32_0 = arith.constant 0 : i32
    return %arg0, %c0_i32 : i32, i32
  }
  func.func @transform_1(%arg0: i32) -> (i32, i32) {
    %c0_i32 = arith.constant 0 : i32
    %c0_i32_0 = arith.constant 0 : i32
    %c0_i32_1 = arith.constant 0 : i32
    return %c0_i32, %c0_i32_0 : i32, i32
  }
  func.func @transform_2(%arg0: i32) -> (i32, i32) {
    %c0_i32 = arith.constant 0 : i32
    %c0_i32_0 = arith.constant 0 : i32
    %c0_i32_1 = arith.constant 0 : i32
    return %c0_i32, %c0_i32_0 : i32, i32
  }
  func.func @transform_3(%arg0: i32) -> (i32, i32) {
    %c0_i32 = arith.constant 0 : i32
    %c0_i32_0 = arith.constant 0 : i32
    return %arg0, %c0_i32 : i32, i32
  }
}

module attributes {stable_mosaic.version = 11 : i64} {
  func.func @_linear_res_ln_single_kernel(%arg0: i32, %arg1: memref<16x32xbf16, #tpu.memory_space<vmem>>, %arg2: memref<32x32xbf16, #tpu.memory_space<vmem>>, %arg3: memref<1x32xf32, #tpu.memory_space<vmem>>, %arg4: memref<16x32xbf16, #tpu.memory_space<vmem>>, %arg5: memref<1x32xf32, #tpu.memory_space<vmem>>, %arg6: memref<1x32xf32, #tpu.memory_space<vmem>>, %arg7: memref<16x32xbf16, #tpu.memory_space<vmem>>) attributes {dimension_semantics = [#tpu.dimension_semantics<parallel>], iteration_bounds = array<i64: 1>, scalar_prefetch = 0 : i64, scratch_operands = 0 : i64, tpu.core_type = #tpu.core_type<tc>, window_params = [{transform_indices = @transform_0, window_bounds = array<i64: 16, 32>}, {pipeline_mode = #tpu.pipeline_mode<synchronous>, transform_indices = @transform_1, window_bounds = array<i64: 32, 32>}, {pipeline_mode = #tpu.pipeline_mode<synchronous>, transform_indices = @transform_2, window_bounds = array<i64: 1, 32>}, {transform_indices = @transform_3, window_bounds = array<i64: 16, 32>}, {pipeline_mode = #tpu.pipeline_mode<synchronous>, transform_indices = @transform_4, window_bounds = array<i64: 1, 32>}, {pipeline_mode = #tpu.pipeline_mode<synchronous>, transform_indices = @transform_5, window_bounds = array<i64: 1, 32>}, {transform_indices = @transform_6, window_bounds = array<i64: 16, 32>}]} {
    %c0 = arith.constant 0 : index
    %c0_0 = arith.constant 0 : index
    %0 = vector.load %arg1[%c0, %c0_0] : memref<16x32xbf16, #tpu.memory_space<vmem>>, vector<16x32xbf16>
    %c0_1 = arith.constant 0 : index
    %c0_2 = arith.constant 0 : index
    %1 = vector.load %arg2[%c0_1, %c0_2] : memref<32x32xbf16, #tpu.memory_space<vmem>>, vector<32x32xbf16>
    %cst = arith.constant dense<0.000000e+00> : vector<16x32xf32>
    %2 = tpu.matmul %0, %1, %cst {dimension_numbers = #tpu.dot_dimension_numbers<[1], [0], [0], [1], [0, 0, 1, 1], [], []>} : vector<16x32xbf16>, vector<32x32xbf16>, vector<16x32xf32> -> vector<16x32xf32>
    %c0_3 = arith.constant 0 : index
    %c0_4 = arith.constant 0 : index
    %3 = vector.load %arg3[%c0_3, %c0_4] : memref<1x32xf32, #tpu.memory_space<vmem>>, vector<1x32xf32>
    %4 = vector.broadcast %3 : vector<1x32xf32> to vector<16x32xf32>
    %5 = arith.addf %2, %4 : vector<16x32xf32>
    %c0_5 = arith.constant 0 : index
    %c0_6 = arith.constant 0 : index
    %6 = vector.load %arg4[%c0_5, %c0_6] : memref<16x32xbf16, #tpu.memory_space<vmem>>, vector<16x32xbf16>
    %7 = arith.extf %6 : vector<16x32xbf16> to vector<16x32xf32>
    %8 = arith.addf %5, %7 : vector<16x32xf32>
    %c0_7 = arith.constant 0 : index
    %c0_8 = arith.constant 0 : index
    %9 = vector.load %arg5[%c0_7, %c0_8] : memref<1x32xf32, #tpu.memory_space<vmem>>, vector<1x32xf32>
    %c0_9 = arith.constant 0 : index
    %c0_10 = arith.constant 0 : index
    %10 = vector.load %arg6[%c0_9, %c0_10] : memref<1x32xf32, #tpu.memory_space<vmem>>, vector<1x32xf32>
    %cst_11 = arith.constant dense<0.000000e+00> : vector<16xf32>
    %11 = vector.multi_reduction <add>, %8, %cst_11 [1] : vector<16x32xf32> to vector<16xf32>
    %12 = vector.shape_cast %11 : vector<16xf32> to vector<16x1xf32>
    %cst_12 = arith.constant 3.200000e+01 : f32
    %13 = vector.broadcast %cst_12 : f32 to vector<16x1xf32>
    %14 = arith.divf %12, %13 : vector<16x1xf32>
    %15 = vector.broadcast %14 : vector<16x1xf32> to vector<16x32xf32>
    %16 = arith.subf %8, %15 : vector<16x32xf32>
    %17 = arith.mulf %16, %16 : vector<16x32xf32>
    %cst_13 = arith.constant dense<0.000000e+00> : vector<16xf32>
    %18 = vector.multi_reduction <add>, %17, %cst_13 [1] : vector<16x32xf32> to vector<16xf32>
    %19 = vector.shape_cast %18 : vector<16xf32> to vector<16x1xf32>
    %cst_14 = arith.constant 3.200000e+01 : f32
    %20 = vector.broadcast %cst_14 : f32 to vector<16x1xf32>
    %21 = arith.divf %19, %20 : vector<16x1xf32>
    %cst_15 = arith.constant 9.99999996E-13 : f32
    %22 = vector.broadcast %cst_15 : f32 to vector<16x1xf32>
    %23 = arith.addf %21, %22 : vector<16x1xf32>
    %24 = math.rsqrt %23 : vector<16x1xf32>
    %25 = vector.broadcast %24 : vector<16x1xf32> to vector<16x32xf32>
    %26 = arith.mulf %16, %25 : vector<16x32xf32>
    %27 = vector.broadcast %9 : vector<1x32xf32> to vector<16x32xf32>
    %28 = arith.mulf %26, %27 : vector<16x32xf32>
    %29 = vector.broadcast %10 : vector<1x32xf32> to vector<16x32xf32>
    %30 = arith.addf %28, %29 : vector<16x32xf32>
    %31 = arith.truncf %30 : vector<16x32xf32> to vector<16x32xbf16>
    %c0_16 = arith.constant 0 : index
    %c0_17 = arith.constant 0 : index
    %32 = vector.load %arg7[%c0_16, %c0_17] : memref<16x32xbf16, #tpu.memory_space<vmem>>, vector<16x32xbf16>
    tpu.vector_store %arg7[%c0_16, %c0_17], %31 {strides = array<i32>} : memref<16x32xbf16, #tpu.memory_space<vmem>>, vector<16x32xbf16>,
    return
  }
  func.func @transform_0(%arg0: i32) -> (i32, i32) {
    %c0_i32 = arith.constant 0 : i32
    %c0_i32_0 = arith.constant 0 : i32
    return %arg0, %c0_i32 : i32, i32
  }
  func.func @transform_1(%arg0: i32) -> (i32, i32) {
    %c0_i32 = arith.constant 0 : i32
    %c0_i32_0 = arith.constant 0 : i32
    %c0_i32_1 = arith.constant 0 : i32
    return %c0_i32, %c0_i32_0 : i32, i32
  }
  func.func @transform_2(%arg0: i32) -> (i32, i32) {
    %c0_i32 = arith.constant 0 : i32
    %c0_i32_0 = arith.constant 0 : i32
    %c0_i32_1 = arith.constant 0 : i32
    return %c0_i32, %c0_i32_0 : i32, i32
  }
  func.func @transform_3(%arg0: i32) -> (i32, i32) {
    %c0_i32 = arith.constant 0 : i32
    %c0_i32_0 = arith.constant 0 : i32
    return %arg0, %c0_i32 : i32, i32
  }
  func.func @transform_4(%arg0: i32) -> (i32, i32) {
    %c0_i32 = arith.constant 0 : i32
    %c0_i32_0 = arith.constant 0 : i32
    %c0_i32_1 = arith.constant 0 : i32
    return %c0_i32, %c0_i32_0 : i32, i32
  }
  func.func @transform_5(%arg0: i32) -> (i32, i32) {
    %c0_i32 = arith.constant 0 : i32
    %c0_i32_0 = arith.constant 0 : i32
    %c0_i32_1 = arith.constant 0 : i32
    return %c0_i32, %c0_i32_0 : i32, i32
  }
  func.func @transform_6(%arg0: i32) -> (i32, i32) {
    %c0_i32 = arith.constant 0 : i32
    %c0_i32_0 = arith.constant 0 : i32
    return %arg0, %c0_i32 : i32, i32
  }
}

module attributes {stable_mosaic.version = 11 : i64} {
  func.func @_attention_kernel(%arg0: i32, %arg1: memref<1x8x96xbf16, #tpu.memory_space<vmem>>, %arg2: memref<1x8x1xf32, #tpu.memory_space<vmem>>, %arg3: memref<1x1x8xf32, #tpu.memory_space<vmem>>, %arg4: memref<1x8x32xbf16, #tpu.memory_space<vmem>>) attributes {dimension_semantics = [#tpu.dimension_semantics<parallel>], iteration_bounds = array<i64: 2>, scalar_prefetch = 0 : i64, scratch_operands = 0 : i64, tpu.core_type = #tpu.core_type<tc>, window_params = [{transform_indices = @transform_0, window_bounds = array<i64: 1, 8, 96>}, {transform_indices = @transform_1, window_bounds = array<i64: 1, 8, 1>}, {transform_indices = @transform_2, window_bounds = array<i64: 1, 1, 8>}, {transform_indices = @transform_3, window_bounds = array<i64: 1, 8, 32>}]} {
    %c0 = arith.constant 0 : index
    %c0_0 = arith.constant 0 : index
    %c0_1 = arith.constant 0 : index
    %0 = vector.load %arg1[%c0, %c0_0, %c0_1] : memref<1x8x96xbf16, #tpu.memory_space<vmem>>, vector<1x8x96xbf16>
    %1 = vector.shape_cast %0 : vector<1x8x96xbf16> to vector<8x96xbf16>
    %c0_2 = arith.constant 0 : index
    %c0_3 = arith.constant 0 : index
    %c0_4 = arith.constant 0 : index
    %2 = vector.load %arg2[%c0_2, %c0_3, %c0_4] : memref<1x8x1xf32, #tpu.memory_space<vmem>>, vector<1x8x1xf32>
    %3 = vector.shape_cast %2 : vector<1x8x1xf32> to vector<8x1xf32>
    %c0_5 = arith.constant 0 : index
    %c0_6 = arith.constant 0 : index
    %c0_7 = arith.constant 0 : index
    %4 = vector.load %arg3[%c0_5, %c0_6, %c0_7] : memref<1x1x8xf32, #tpu.memory_space<vmem>>, vector<1x1x8xf32>
    %5 = vector.shape_cast %4 : vector<1x1x8xf32> to vector<1x8xf32>
    %6 = vector.broadcast %3 : vector<8x1xf32> to vector<8x8xf32>
    %7 = vector.broadcast %5 : vector<1x8xf32> to vector<8x8xf32>
    %8 = arith.mulf %6, %7 : vector<8x8xf32>
    %cst = arith.constant 0.000000e+00 : f32
    %9 = vector.broadcast %cst : f32 to vector<8x8xf32>
    %10 = arith.cmpf oeq, %8, %9 : vector<8x8xf32>
    %11 = vector.extract_strided_slice %1 {offsets = [0, 0], sizes = [8, 8], strides = [1, 1]} : vector<8x96xbf16> to vector<8x8xbf16>
    %12 = vector.extract_strided_slice %1 {offsets = [0, 32], sizes = [8, 8], strides = [1, 1]} : vector<8x96xbf16> to vector<8x8xbf16>
    %13 = vector.extract_strided_slice %1 {offsets = [0, 64], sizes = [8, 8], strides = [1, 1]} : vector<8x96xbf16> to vector<8x8xbf16>
    %cst_8 = arith.constant dense<0.000000e+00> : vector<8x8xf32>
    %14 = tpu.matmul %11, %12, %cst_8 {dimension_numbers = #tpu.dot_dimension_numbers<[1], [1], [0], [0], [0, 0, 1, 0], [], []>} : vector<8x8xbf16>, vector<8x8xbf16>, vector<8x8xf32> -> vector<8x8xf32>
    %cst_9 = arith.constant 0.353553385 : f32
    %15 = vector.broadcast %cst_9 : f32 to vector<8x8xf32>
    %16 = arith.mulf %14, %15 : vector<8x8xf32>
    %cst_10 = arith.constant -1.000000e+09 : f32
    %17 = vector.broadcast %cst_10 : f32 to vector<8x8xf32>
    %18 = arith.select %10, %17, %16 : vector<8x8xi1>, vector<8x8xf32>
    %cst_11 = arith.constant dense<0xFF800000> : vector<8xf32>
    %19 = vector.multi_reduction <maximumf>, %18, %cst_11 [1] : vector<8x8xf32> to vector<8xf32>
    %20 = vector.shape_cast %19 : vector<8xf32> to vector<8x1xf32>
    %21 = vector.broadcast %20 : vector<8x1xf32> to vector<8x8xf32>
    %22 = arith.subf %18, %21 : vector<8x8xf32>
    %23 = math.exp %22 : vector<8x8xf32>
    %cst_12 = arith.constant dense<0.000000e+00> : vector<8xf32>
    %24 = vector.multi_reduction <add>, %23, %cst_12 [1] : vector<8x8xf32> to vector<8xf32>
    %25 = vector.shape_cast %24 : vector<8xf32> to vector<8x1xf32>
    %26 = tpu.reciprocal %25 {approx = true} : vector<8x1xf32> -> vector<8x1xf32>
    %27 = vector.broadcast %26 : vector<8x1xf32> to vector<8x8xf32>
    %28 = arith.mulf %23, %27 : vector<8x8xf32>
    %29 = arith.truncf %28 : vector<8x8xf32> to vector<8x8xbf16>
    %cst_13 = arith.constant dense<0.000000e+00> : vector<8x8xf32>
    %30 = tpu.matmul %29, %13, %cst_13 {dimension_numbers = #tpu.dot_dimension_numbers<[1], [0], [0], [1], [0, 0, 1, 1], [], []>} : vector<8x8xbf16>, vector<8x8xbf16>, vector<8x8xf32> -> vector<8x8xf32>
    %31 = vector.extract_strided_slice %1 {offsets = [0, 8], sizes = [8, 8], strides = [1, 1]} : vector<8x96xbf16> to vector<8x8xbf16>
    %32 = vector.extract_strided_slice %1 {offsets = [0, 40], sizes = [8, 8], strides = [1, 1]} : vector<8x96xbf16> to vector<8x8xbf16>
    %33 = vector.extract_strided_slice %1 {offsets = [0, 72], sizes = [8, 8], strides = [1, 1]} : vector<8x96xbf16> to vector<8x8xbf16>
    %cst_14 = arith.constant dense<0.000000e+00> : vector<8x8xf32>
    %34 = tpu.matmul %31, %32, %cst_14 {dimension_numbers = #tpu.dot_dimension_numbers<[1], [1], [0], [0], [0, 0, 1, 0], [], []>} : vector<8x8xbf16>, vector<8x8xbf16>, vector<8x8xf32> -> vector<8x8xf32>
    %cst_15 = arith.constant 0.353553385 : f32
    %35 = vector.broadcast %cst_15 : f32 to vector<8x8xf32>
    %36 = arith.mulf %34, %35 : vector<8x8xf32>
    %cst_16 = arith.constant -1.000000e+09 : f32
    %37 = vector.broadcast %cst_16 : f32 to vector<8x8xf32>
    %38 = arith.select %10, %37, %36 : vector<8x8xi1>, vector<8x8xf32>
    %cst_17 = arith.constant dense<0xFF800000> : vector<8xf32>
    %39 = vector.multi_reduction <maximumf>, %38, %cst_17 [1] : vector<8x8xf32> to vector<8xf32>
    %40 = vector.shape_cast %39 : vector<8xf32> to vector<8x1xf32>
    %41 = vector.broadcast %40 : vector<8x1xf32> to vector<8x8xf32>
    %42 = arith.subf %38, %41 : vector<8x8xf32>
    %43 = math.exp %42 : vector<8x8xf32>
    %cst_18 = arith.constant dense<0.000000e+00> : vector<8xf32>
    %44 = vector.multi_reduction <add>, %43, %cst_18 [1] : vector<8x8xf32> to vector<8xf32>
    %45 = vector.shape_cast %44 : vector<8xf32> to vector<8x1xf32>
    %46 = tpu.reciprocal %45 {approx = true} : vector<8x1xf32> -> vector<8x1xf32>
    %47 = vector.broadcast %46 : vector<8x1xf32> to vector<8x8xf32>
    %48 = arith.mulf %43, %47 : vector<8x8xf32>
    %49 = arith.truncf %48 : vector<8x8xf32> to vector<8x8xbf16>
    %cst_19 = arith.constant dense<0.000000e+00> : vector<8x8xf32>
    %50 = tpu.matmul %49, %33, %cst_19 {dimension_numbers = #tpu.dot_dimension_numbers<[1], [0], [0], [1], [0, 0, 1, 1], [], []>} : vector<8x8xbf16>, vector<8x8xbf16>, vector<8x8xf32> -> vector<8x8xf32>
    %51 = vector.extract_strided_slice %1 {offsets = [0, 16], sizes = [8, 8], strides = [1, 1]} : vector<8x96xbf16> to vector<8x8xbf16>
    %52 = vector.extract_strided_slice %1 {offsets = [0, 48], sizes = [8, 8], strides = [1, 1]} : vector<8x96xbf16> to vector<8x8xbf16>
    %53 = vector.extract_strided_slice %1 {offsets = [0, 80], sizes = [8, 8], strides = [1, 1]} : vector<8x96xbf16> to vector<8x8xbf16>
    %cst_20 = arith.constant dense<0.000000e+00> : vector<8x8xf32>
    %54 = tpu.matmul %51, %52, %cst_20 {dimension_numbers = #tpu.dot_dimension_numbers<[1], [1], [0], [0], [0, 0, 1, 0], [], []>} : vector<8x8xbf16>, vector<8x8xbf16>, vector<8x8xf32> -> vector<8x8xf32>
    %cst_21 = arith.constant 0.353553385 : f32
    %55 = vector.broadcast %cst_21 : f32 to vector<8x8xf32>
    %56 = arith.mulf %54, %55 : vector<8x8xf32>
    %cst_22 = arith.constant -1.000000e+09 : f32
    %57 = vector.broadcast %cst_22 : f32 to vector<8x8xf32>
    %58 = arith.select %10, %57, %56 : vector<8x8xi1>, vector<8x8xf32>
    %cst_23 = arith.constant dense<0xFF800000> : vector<8xf32>
    %59 = vector.multi_reduction <maximumf>, %58, %cst_23 [1] : vector<8x8xf32> to vector<8xf32>
    %60 = vector.shape_cast %59 : vector<8xf32> to vector<8x1xf32>
    %61 = vector.broadcast %60 : vector<8x1xf32> to vector<8x8xf32>
    %62 = arith.subf %58, %61 : vector<8x8xf32>
    %63 = math.exp %62 : vector<8x8xf32>
    %cst_24 = arith.constant dense<0.000000e+00> : vector<8xf32>
    %64 = vector.multi_reduction <add>, %63, %cst_24 [1] : vector<8x8xf32> to vector<8xf32>
    %65 = vector.shape_cast %64 : vector<8xf32> to vector<8x1xf32>
    %66 = tpu.reciprocal %65 {approx = true} : vector<8x1xf32> -> vector<8x1xf32>
    %67 = vector.broadcast %66 : vector<8x1xf32> to vector<8x8xf32>
    %68 = arith.mulf %63, %67 : vector<8x8xf32>
    %69 = arith.truncf %68 : vector<8x8xf32> to vector<8x8xbf16>
    %cst_25 = arith.constant dense<0.000000e+00> : vector<8x8xf32>
    %70 = tpu.matmul %69, %53, %cst_25 {dimension_numbers = #tpu.dot_dimension_numbers<[1], [0], [0], [1], [0, 0, 1, 1], [], []>} : vector<8x8xbf16>, vector<8x8xbf16>, vector<8x8xf32> -> vector<8x8xf32>
    %71 = vector.extract_strided_slice %1 {offsets = [0, 24], sizes = [8, 8], strides = [1, 1]} : vector<8x96xbf16> to vector<8x8xbf16>
    %72 = vector.extract_strided_slice %1 {offsets = [0, 56], sizes = [8, 8], strides = [1, 1]} : vector<8x96xbf16> to vector<8x8xbf16>
    %73 = vector.extract_strided_slice %1 {offsets = [0, 88], sizes = [8, 8], strides = [1, 1]} : vector<8x96xbf16> to vector<8x8xbf16>
    %cst_26 = arith.constant dense<0.000000e+00> : vector<8x8xf32>
    %74 = tpu.matmul %71, %72, %cst_26 {dimension_numbers = #tpu.dot_dimension_numbers<[1], [1], [0], [0], [0, 0, 1, 0], [], []>} : vector<8x8xbf16>, vector<8x8xbf16>, vector<8x8xf32> -> vector<8x8xf32>
    %cst_27 = arith.constant 0.353553385 : f32
    %75 = vector.broadcast %cst_27 : f32 to vector<8x8xf32>
    %76 = arith.mulf %74, %75 : vector<8x8xf32>
    %cst_28 = arith.constant -1.000000e+09 : f32
    %77 = vector.broadcast %cst_28 : f32 to vector<8x8xf32>
    %78 = arith.select %10, %77, %76 : vector<8x8xi1>, vector<8x8xf32>
    %cst_29 = arith.constant dense<0xFF800000> : vector<8xf32>
    %79 = vector.multi_reduction <maximumf>, %78, %cst_29 [1] : vector<8x8xf32> to vector<8xf32>
    %80 = vector.shape_cast %79 : vector<8xf32> to vector<8x1xf32>
    %81 = vector.broadcast %80 : vector<8x1xf32> to vector<8x8xf32>
    %82 = arith.subf %78, %81 : vector<8x8xf32>
    %83 = math.exp %82 : vector<8x8xf32>
    %cst_30 = arith.constant dense<0.000000e+00> : vector<8xf32>
    %84 = vector.multi_reduction <add>, %83, %cst_30 [1] : vector<8x8xf32> to vector<8xf32>
    %85 = vector.shape_cast %84 : vector<8xf32> to vector<8x1xf32>
    %86 = tpu.reciprocal %85 {approx = true} : vector<8x1xf32> -> vector<8x1xf32>
    %87 = vector.broadcast %86 : vector<8x1xf32> to vector<8x8xf32>
    %88 = arith.mulf %83, %87 : vector<8x8xf32>
    %89 = arith.truncf %88 : vector<8x8xf32> to vector<8x8xbf16>
    %cst_31 = arith.constant dense<0.000000e+00> : vector<8x8xf32>
    %90 = tpu.matmul %89, %73, %cst_31 {dimension_numbers = #tpu.dot_dimension_numbers<[1], [0], [0], [1], [0, 0, 1, 1], [], []>} : vector<8x8xbf16>, vector<8x8xbf16>, vector<8x8xf32> -> vector<8x8xf32>
    %91 = tpu.concatenate %30, %50, %70, %90 in 1 : vector<8x8xf32>, vector<8x8xf32>, vector<8x8xf32>, vector<8x8xf32> -> vector<8x32xf32>
    %92 = arith.truncf %91 : vector<8x32xf32> to vector<8x32xbf16>
    %c0_32 = arith.constant 0 : index
    %c0_33 = arith.constant 0 : index
    %c0_34 = arith.constant 0 : index
    %93 = vector.load %arg4[%c0_32, %c0_33, %c0_34] : memref<1x8x32xbf16, #tpu.memory_space<vmem>>, vector<1x8x32xbf16>
    %94 = vector.shape_cast %93 : vector<1x8x32xbf16> to vector<8x32xbf16>
    %95 = vector.shape_cast %92 : vector<8x32xbf16> to vector<1x8x32xbf16>
    tpu.vector_store %arg4[%c0_32, %c0_33, %c0_34], %95 {strides = array<i32>} : memref<1x8x32xbf16, #tpu.memory_space<vmem>>, vector<1x8x32xbf16>,
    return
  }
  func.func @transform_0(%arg0: i32) -> (i32, i32, i32) {
    %c0_i32 = arith.constant 0 : i32
    %c0_i32_0 = arith.constant 0 : i32
    %c0_i32_1 = arith.constant 0 : i32
    return %arg0, %c0_i32, %c0_i32_0 : i32, i32, i32
  }
  func.func @transform_1(%arg0: i32) -> (i32, i32, i32) {
    %c0_i32 = arith.constant 0 : i32
    %c0_i32_0 = arith.constant 0 : i32
    %c0_i32_1 = arith.constant 0 : i32
    return %arg0, %c0_i32, %c0_i32_0 : i32, i32, i32
  }
  func.func @transform_2(%arg0: i32) -> (i32, i32, i32) {
    %c0_i32 = arith.constant 0 : i32
    %c0_i32_0 = arith.constant 0 : i32
    %c0_i32_1 = arith.constant 0 : i32
    return %arg0, %c0_i32, %c0_i32_0 : i32, i32, i32
  }
  func.func @transform_3(%arg0: i32) -> (i32, i32, i32) {
    %c0_i32 = arith.constant 0 : i32
    %c0_i32_0 = arith.constant 0 : i32
    %c0_i32_1 = arith.constant 0 : i32
    return %arg0, %c0_i32, %c0_i32_0 : i32, i32, i32
  }
}

module attributes {stable_mosaic.version = 11 : i64} {
  func.func @_linear_single_kernel(%arg0: i32, %arg1: memref<16x32xbf16, #tpu.memory_space<vmem>>, %arg2: memref<32x64xbf16, #tpu.memory_space<vmem>>, %arg3: memref<1x64xf32, #tpu.memory_space<vmem>>, %arg4: memref<16x64xbf16, #tpu.memory_space<vmem>>) attributes {dimension_semantics = [#tpu.dimension_semantics<parallel>], iteration_bounds = array<i64: 1>, scalar_prefetch = 0 : i64, scratch_operands = 0 : i64, tpu.core_type = #tpu.core_type<tc>, window_params = [{transform_indices = @transform_0, window_bounds = array<i64: 16, 32>}, {pipeline_mode = #tpu.pipeline_mode<synchronous>, transform_indices = @transform_1, window_bounds = array<i64: 32, 64>}, {pipeline_mode = #tpu.pipeline_mode<synchronous>, transform_indices = @transform_2, window_bounds = array<i64: 1, 64>}, {transform_indices = @transform_3, window_bounds = array<i64: 16, 64>}]} {
    %c0 = arith.constant 0 : index
    %c0_0 = arith.constant 0 : index
    %0 = vector.load %arg1[%c0, %c0_0] : memref<16x32xbf16, #tpu.memory_space<vmem>>, vector<16x32xbf16>
    %c0_1 = arith.constant 0 : index
    %c0_2 = arith.constant 0 : index
    %1 = vector.load %arg2[%c0_1, %c0_2] : memref<32x64xbf16, #tpu.memory_space<vmem>>, vector<32x64xbf16>
    %cst = arith.constant dense<0.000000e+00> : vector<16x64xf32>
    %2 = tpu.matmul %0, %1, %cst {dimension_numbers = #tpu.dot_dimension_numbers<[1], [0], [0], [1], [0, 0, 1, 1], [], []>} : vector<16x32xbf16>, vector<32x64xbf16>, vector<16x64xf32> -> vector<16x64xf32>
    %c0_3 = arith.constant 0 : index
    %c0_4 = arith.constant 0 : index
    %3 = vector.load %arg3[%c0_3, %c0_4] : memref<1x64xf32, #tpu.memory_space<vmem>>, vector<1x64xf32>
    %4 = vector.broadcast %3 : vector<1x64xf32> to vector<16x64xf32>
    %5 = arith.addf %2, %4 : vector<16x64xf32>
    %cst_5 = arith.constant 5.000000e-01 : f32
    %6 = vector.broadcast %cst_5 : f32 to vector<16x64xf32>
    %7 = arith.mulf %6, %5 : vector<16x64xf32>
    %cst_6 = arith.constant 4.471500e-02 : f32
    %8 = vector.broadcast %cst_6 : f32 to vector<16x64xf32>
    %9 = arith.mulf %8, %5 : vector<16x64xf32>
    %10 = arith.mulf %9, %5 : vector<16x64xf32>
    %11 = arith.mulf %10, %5 : vector<16x64xf32>
    %12 = arith.addf %5, %11 : vector<16x64xf32>
    %cst_7 = arith.constant 0.797884583 : f32
    %13 = vector.broadcast %cst_7 : f32 to vector<16x64xf32>
    %14 = arith.mulf %13, %12 : vector<16x64xf32>
    %15 = math.tanh %14 : vector<16x64xf32>
    %cst_8 = arith.constant 1.000000e+00 : f32
    %16 = vector.broadcast %cst_8 : f32 to vector<16x64xf32>
    %17 = arith.addf %16, %15 : vector<16x64xf32>
    %18 = arith.mulf %7, %17 : vector<16x64xf32>
    %19 = arith.truncf %18 : vector<16x64xf32> to vector<16x64xbf16>
    %c0_9 = arith.constant 0 : index
    %c0_10 = arith.constant 0 : index
    %20 = vector.load %arg4[%c0_9, %c0_10] : memref<16x64xbf16, #tpu.memory_space<vmem>>, vector<16x64xbf16>
    tpu.vector_store %arg4[%c0_9, %c0_10], %19 {strides = array<i32>} : memref<16x64xbf16, #tpu.memory_space<vmem>>, vector<16x64xbf16>,
    return
  }
  func.func @transform_0(%arg0: i32) -> (i32, i32) {
    %c0_i32 = arith.constant 0 : i32
    %c0_i32_0 = arith.constant 0 : i32
    return %arg0, %c0_i32 : i32, i32
  }
  func.func @transform_1(%arg0: i32) -> (i32, i32) {
    %c0_i32 = arith.constant 0 : i32
    %c0_i32_0 = arith.constant 0 : i32
    %c0_i32_1 = arith.constant 0 : i32
    return %c0_i32, %c0_i32_0 : i32, i32
  }
  func.func @transform_2(%arg0: i32) -> (i32, i32) {
    %c0_i32 = arith.constant 0 : i32
    %c0_i32_0 = arith.constant 0 : i32
    %c0_i32_1 = arith.constant 0 : i32
    return %c0_i32, %c0_i32_0 : i32, i32
  }
  func.func @transform_3(%arg0: i32) -> (i32, i32) {
    %c0_i32 = arith.constant 0 : i32
    %c0_i32_0 = arith.constant 0 : i32
    return %arg0, %c0_i32 : i32, i32
  }
}

module attributes {stable_mosaic.version = 11 : i64} {
  func.func @_linear_res_ln_single_kernel(%arg0: i32, %arg1: memref<16x64xbf16, #tpu.memory_space<vmem>>, %arg2: memref<64x32xbf16, #tpu.memory_space<vmem>>, %arg3: memref<1x32xf32, #tpu.memory_space<vmem>>, %arg4: memref<16x32xbf16, #tpu.memory_space<vmem>>, %arg5: memref<1x32xf32, #tpu.memory_space<vmem>>, %arg6: memref<1x32xf32, #tpu.memory_space<vmem>>, %arg7: memref<16x32xbf16, #tpu.memory_space<vmem>>) attributes {dimension_semantics = [#tpu.dimension_semantics<parallel>], iteration_bounds = array<i64: 1>, scalar_prefetch = 0 : i64, scratch_operands = 0 : i64, tpu.core_type = #tpu.core_type<tc>, window_params = [{transform_indices = @transform_0, window_bounds = array<i64: 16, 64>}, {pipeline_mode = #tpu.pipeline_mode<synchronous>, transform_indices = @transform_1, window_bounds = array<i64: 64, 32>}, {pipeline_mode = #tpu.pipeline_mode<synchronous>, transform_indices = @transform_2, window_bounds = array<i64: 1, 32>}, {transform_indices = @transform_3, window_bounds = array<i64: 16, 32>}, {pipeline_mode = #tpu.pipeline_mode<synchronous>, transform_indices = @transform_4, window_bounds = array<i64: 1, 32>}, {pipeline_mode = #tpu.pipeline_mode<synchronous>, transform_indices = @transform_5, window_bounds = array<i64: 1, 32>}, {transform_indices = @transform_6, window_bounds = array<i64: 16, 32>}]} {
    %c0 = arith.constant 0 : index
    %c0_0 = arith.constant 0 : index
    %0 = vector.load %arg1[%c0, %c0_0] : memref<16x64xbf16, #tpu.memory_space<vmem>>, vector<16x64xbf16>
    %c0_1 = arith.constant 0 : index
    %c0_2 = arith.constant 0 : index
    %1 = vector.load %arg2[%c0_1, %c0_2] : memref<64x32xbf16, #tpu.memory_space<vmem>>, vector<64x32xbf16>
    %cst = arith.constant dense<0.000000e+00> : vector<16x32xf32>
    %2 = tpu.matmul %0, %1, %cst {dimension_numbers = #tpu.dot_dimension_numbers<[1], [0], [0], [1], [0, 0, 1, 1], [], []>} : vector<16x64xbf16>, vector<64x32xbf16>, vector<16x32xf32> -> vector<16x32xf32>
    %c0_3 = arith.constant 0 : index
    %c0_4 = arith.constant 0 : index
    %3 = vector.load %arg3[%c0_3, %c0_4] : memref<1x32xf32, #tpu.memory_space<vmem>>, vector<1x32xf32>
    %4 = vector.broadcast %3 : vector<1x32xf32> to vector<16x32xf32>
    %5 = arith.addf %2, %4 : vector<16x32xf32>
    %c0_5 = arith.constant 0 : index
    %c0_6 = arith.constant 0 : index
    %6 = vector.load %arg4[%c0_5, %c0_6] : memref<16x32xbf16, #tpu.memory_space<vmem>>, vector<16x32xbf16>
    %7 = arith.extf %6 : vector<16x32xbf16> to vector<16x32xf32>
    %8 = arith.addf %5, %7 : vector<16x32xf32>
    %c0_7 = arith.constant 0 : index
    %c0_8 = arith.constant 0 : index
    %9 = vector.load %arg5[%c0_7, %c0_8] : memref<1x32xf32, #tpu.memory_space<vmem>>, vector<1x32xf32>
    %c0_9 = arith.constant 0 : index
    %c0_10 = arith.constant 0 : index
    %10 = vector.load %arg6[%c0_9, %c0_10] : memref<1x32xf32, #tpu.memory_space<vmem>>, vector<1x32xf32>
    %cst_11 = arith.constant dense<0.000000e+00> : vector<16xf32>
    %11 = vector.multi_reduction <add>, %8, %cst_11 [1] : vector<16x32xf32> to vector<16xf32>
    %12 = vector.shape_cast %11 : vector<16xf32> to vector<16x1xf32>
    %cst_12 = arith.constant 3.200000e+01 : f32
    %13 = vector.broadcast %cst_12 : f32 to vector<16x1xf32>
    %14 = arith.divf %12, %13 : vector<16x1xf32>
    %15 = vector.broadcast %14 : vector<16x1xf32> to vector<16x32xf32>
    %16 = arith.subf %8, %15 : vector<16x32xf32>
    %17 = arith.mulf %16, %16 : vector<16x32xf32>
    %cst_13 = arith.constant dense<0.000000e+00> : vector<16xf32>
    %18 = vector.multi_reduction <add>, %17, %cst_13 [1] : vector<16x32xf32> to vector<16xf32>
    %19 = vector.shape_cast %18 : vector<16xf32> to vector<16x1xf32>
    %cst_14 = arith.constant 3.200000e+01 : f32
    %20 = vector.broadcast %cst_14 : f32 to vector<16x1xf32>
    %21 = arith.divf %19, %20 : vector<16x1xf32>
    %cst_15 = arith.constant 9.99999996E-13 : f32
    %22 = vector.broadcast %cst_15 : f32 to vector<16x1xf32>
    %23 = arith.addf %21, %22 : vector<16x1xf32>
    %24 = math.rsqrt %23 : vector<16x1xf32>
    %25 = vector.broadcast %24 : vector<16x1xf32> to vector<16x32xf32>
    %26 = arith.mulf %16, %25 : vector<16x32xf32>
    %27 = vector.broadcast %9 : vector<1x32xf32> to vector<16x32xf32>
    %28 = arith.mulf %26, %27 : vector<16x32xf32>
    %29 = vector.broadcast %10 : vector<1x32xf32> to vector<16x32xf32>
    %30 = arith.addf %28, %29 : vector<16x32xf32>
    %31 = arith.truncf %30 : vector<16x32xf32> to vector<16x32xbf16>
    %c0_16 = arith.constant 0 : index
    %c0_17 = arith.constant 0 : index
    %32 = vector.load %arg7[%c0_16, %c0_17] : memref<16x32xbf16, #tpu.memory_space<vmem>>, vector<16x32xbf16>
    tpu.vector_store %arg7[%c0_16, %c0_17], %31 {strides = array<i32>} : memref<16x32xbf16, #tpu.memory_space<vmem>>, vector<16x32xbf16>,
    return
  }
  func.func @transform_0(%arg0: i32) -> (i32, i32) {
    %c0_i32 = arith.constant 0 : i32
    %c0_i32_0 = arith.constant 0 : i32
    return %arg0, %c0_i32 : i32, i32
  }
  func.func @transform_1(%arg0: i32) -> (i32, i32) {
    %c0_i32 = arith.constant 0 : i32
    %c0_i32_0 = arith.constant 0 : i32
    %c0_i32_1 = arith.constant 0 : i32
    return %c0_i32, %c0_i32_0 : i32, i32
  }
  func.func @transform_2(%arg0: i32) -> (i32, i32) {
    %c0_i32 = arith.constant 0 : i32
    %c0_i32_0 = arith.constant 0 : i32
    %c0_i32_1 = arith.constant 0 : i32
    return %c0_i32, %c0_i32_0 : i32, i32
  }
  func.func @transform_3(%arg0: i32) -> (i32, i32) {
    %c0_i32 = arith.constant 0 : i32
    %c0_i32_0 = arith.constant 0 : i32
    return %arg0, %c0_i32 : i32, i32
  }
  func.func @transform_4(%arg0: i32) -> (i32, i32) {
    %c0_i32 = arith.constant 0 : i32
    %c0_i32_0 = arith.constant 0 : i32
    %c0_i32_1 = arith.constant 0 : i32
    return %c0_i32, %c0_i32_0 : i32, i32
  }
  func.func @transform_5(%arg0: i32) -> (i32, i32) {
    %c0_i32 = arith.constant 0 : i32
    %c0_i32_0 = arith.constant 0 : i32
    %c0_i32_1 = arith.constant 0 : i32
    return %c0_i32, %c0_i32_0 : i32, i32
  }
  func.func @transform_6(%arg0: i32) -> (i32, i32) {
    %c0_i32 = arith.constant 0 : i32
    %c0_i32_0 = arith.constant 0 : i32
    return %arg0, %c0_i32 : i32, i32
  }
}

module attributes {stable_mosaic.version = 11 : i64} {
  func.func @_linear_single_kernel(%arg0: i32, %arg1: memref<2x32xbf16, #tpu.memory_space<vmem>>, %arg2: memref<32x32xbf16, #tpu.memory_space<vmem>>, %arg3: memref<1x32xf32, #tpu.memory_space<vmem>>, %arg4: memref<2x32xf32, #tpu.memory_space<vmem>>) attributes {dimension_semantics = [#tpu.dimension_semantics<parallel>], iteration_bounds = array<i64: 1>, scalar_prefetch = 0 : i64, scratch_operands = 0 : i64, tpu.core_type = #tpu.core_type<tc>, window_params = [{transform_indices = @transform_0, window_bounds = array<i64: 2, 32>}, {pipeline_mode = #tpu.pipeline_mode<synchronous>, transform_indices = @transform_1, window_bounds = array<i64: 32, 32>}, {pipeline_mode = #tpu.pipeline_mode<synchronous>, transform_indices = @transform_2, window_bounds = array<i64: 1, 32>}, {transform_indices = @transform_3, window_bounds = array<i64: 2, 32>}]} {
    %c0 = arith.constant 0 : index
    %c0_0 = arith.constant 0 : index
    %0 = vector.load %arg1[%c0, %c0_0] : memref<2x32xbf16, #tpu.memory_space<vmem>>, vector<2x32xbf16>
    %c0_1 = arith.constant 0 : index
    %c0_2 = arith.constant 0 : index
    %1 = vector.load %arg2[%c0_1, %c0_2] : memref<32x32xbf16, #tpu.memory_space<vmem>>, vector<32x32xbf16>
    %cst = arith.constant dense<0.000000e+00> : vector<2x32xf32>
    %2 = tpu.matmul %0, %1, %cst {dimension_numbers = #tpu.dot_dimension_numbers<[1], [0], [0], [1], [0, 0, 1, 1], [], []>} : vector<2x32xbf16>, vector<32x32xbf16>, vector<2x32xf32> -> vector<2x32xf32>
    %c0_3 = arith.constant 0 : index
    %c0_4 = arith.constant 0 : index
    %3 = vector.load %arg3[%c0_3, %c0_4] : memref<1x32xf32, #tpu.memory_space<vmem>>, vector<1x32xf32>
    %4 = vector.broadcast %3 : vector<1x32xf32> to vector<2x32xf32>
    %5 = arith.addf %2, %4 : vector<2x32xf32>
    %6 = math.tanh %5 : vector<2x32xf32>
    %c0_5 = arith.constant 0 : index
    %c0_6 = arith.constant 0 : index
    %7 = vector.load %arg4[%c0_5, %c0_6] : memref<2x32xf32, #tpu.memory_space<vmem>>, vector<2x32xf32>
    tpu.vector_store %arg4[%c0_5, %c0_6], %6 {strides = array<i32>} : memref<2x32xf32, #tpu.memory_space<vmem>>, vector<2x32xf32>,
    return
  }
  func.func @transform_0(%arg0: i32) -> (i32, i32) {
    %c0_i32 = arith.constant 0 : i32
    %c0_i32_0 = arith.constant 0 : i32
    return %arg0, %c0_i32 : i32, i32
  }
  func.func @transform_1(%arg0: i32) -> (i32, i32) {
    %c0_i32 = arith.constant 0 : i32
    %c0_i32_0 = arith.constant 0 : i32
    %c0_i32_1 = arith.constant 0 : i32
    return %c0_i32, %c0_i32_0 : i32, i32
  }
  func.func @transform_2(%arg0: i32) -> (i32, i32) {
    %c0_i32 = arith.constant 0 : i32
    %c0_i32_0 = arith.constant 0 : i32
    %c0_i32_1 = arith.constant 0 : i32
    return %c0_i32, %c0_i32_0 : i32, i32
  }
  func.func @transform_3(%arg0: i32) -> (i32, i32) {
    %c0_i32 = arith.constant 0 : i32
    %c0_i32_0 = arith.constant 0 : i32
    return %arg0, %c0_i32 : i32, i32
  }
}

</mosaic_0001>

<bundles_post_ra>
// kernel: _lambda_.12
= control target key start
LH: loop header
LB: loop body
LE: loop exit
PB: predicated region body
PF: predicated region fallthrough
CT: control target
= control target key end

     0   :  { %vm18_vm0 = vcmask 261120   ;;  %vm70_vm1 = vcmask 257024   ;;  %s129_s0 = inlined_call_operand.vmem [shape: f32[16,32], index: 0, kind: input, shape index: {}]   ;;  %s130_s1 = inlined_call_operand.vmem [shape: f32[1,32], index: 1, kind: input, shape index: {}]   ;;  %s131_s2 = inlined_call_operand.vmem [shape: f32[1,32], index: 2, kind: input, shape index: {}]   ;;  %s132_s3 = inlined_call_operand.vmem [shape: bf16[16,32], index: 3, kind: output, shape index: {}]  }
   0x1   :  { %v14_v0 = vld [vmem:[%s129_s0] sm:$0xff]  ;;  %v15_v1 = vld [vmem:[%s129_s0 + $0x8] sm:$0xff] }
   0x2   :  { %v19_v2 = vsel %vm18_vm0, %v14_v0, 0.0  ;;  %v22_v3 = vsel %vm18_vm0, %v15_v1, 0.0  ;;  %v77_v21 = vld [vmem:[%s130_s1] ss:$0 sm:$0xff] }
   0x3   :  { %20 = vadd.xlane.f32.xlu0 %v19_v2  ;;  %v78_v23 = vld [vmem:[%s131_s2] ss:$0 sm:$0xff] }
   0x7   :  { %23 = vadd.xlane.f32.xlu0 %v22_v3 }
  0x8c   :  { %v21_v4 = vpop.xlane.xlu0 %20 }
  0x8d   :  { %v26_v5 = vmul.f32 0.03125, %v21_v4 }
  0x8f   :  { %v28_v6 = vsub.f32 %v14_v0, %v26_v5 }
  0x90   :  { %v24_v7 = vpop.xlane.xlu0 %23 }
  0x91   :  { %v27_v8 = vmul.f32 0.03125, %v24_v7  ;;  %v30_v9 = vmul.f32 %v28_v6, %v28_v6 }
  0x93   :  { %v29_v10 = vsub.f32 %v15_v1, %v27_v8  ;;  %v32_v11 = vsel %vm18_vm0, %v30_v9, 0.0 }
  0x94   :  { %33 = vadd.xlane.f32.xlu1 %v32_v11 }
  0x95   :  { %v31_v12 = vmul.f32 %v29_v10, %v29_v10 }
  0x97   :  { %v35_v13 = vsel %vm18_vm0, %v31_v12, 0.0 }
  0x98   :  { %36 = vadd.xlane.f32.xlu1 %v35_v13 }
 0x11d   :  { %v34_v14 = vpop.xlane.xlu1 %33 }
 0x11e   :  { %v38_v15 = vmul.f32 0.03125, %v34_v14 }
 0x120   :  { %v40_v16 = vadd.f32 1e-12, %v38_v15 }
 0x121   :  { %v37_v17 = vpop.xlane.xlu1 %36 }
 0x122   :  { %83 = vrsqrt.f32 %v40_v16  ;;  %v39_v18 = vmul.f32 0.03125, %v37_v17 }
 0x124   :  { %v41_v19 = vadd.f32 1e-12, %v39_v18 }
 0x126   :  { %85 = vrsqrt.f32 %v41_v19 }
 0x12f   :  { %v84_v20 = vpop.eup %83 }
 0x130   :  { %v44_v22 = vmul.f32 %v84_v20, %v28_v6 }
 0x132   :  { %v52_v24 = vmul.f32 %v77_v21, %v44_v22 }
 0x133   :  { %v86_v25 = vpop.eup %85 }
 0x134   :  { %v60_v26 = vadd.f32 %v78_v23, %v52_v24  ;;  %v45_v27 = vmul.f32 %v86_v25, %v29_v10 }
 0x136   :  { %v81_v28 = vpack.c.bf16 %v60_v26, %v60_v26  ;;  %v53_v29 = vmul.f32 %v77_v21, %v45_v27 }
 0x138   :  { %71 = vst.msk [vmem:[%s132_s3] sm:$0xf] %vm70_vm1, %v81_v28  ;;  %v61_v30 = vadd.f32 %v78_v23, %v53_v29 }
 0x13a   :  { %v82_v31 = vpack.c.bf16 %v61_v30, %v61_v30 }
 0x13c   :  { %72 = vst.msk [vmem:[%s132_s3 + $0x4] sm:$0xf] %vm70_vm1, %v82_v31 }

// kernel: _lambda_.13
= control target key start
LH: loop header
LB: loop body
LE: loop exit
PB: predicated region body
PF: predicated region fallthrough
CT: control target
= control target key end

     0   :  { %v130_v0 = vmov 0.0   ;;  %vm131_vm0 = vmmov 0   ;;  %vm45_vm1 = vcmask 261120   ;;  %vm98_vm2 = vcmask 781312   ;;  %s170_s1 = inlined_call_operand.vmem [shape: bf16[32,96], index: 1, kind: input, shape index: {}]   ;;  %s171_s0 = inlined_call_operand.vmem [shape: bf16[16,32], index: 0, kind: input, shape index: {}]   ;;  %s172_s2 = inlined_call_operand.vmem [shape: f32[1,96], index: 2, kind: input, shape index: {}]   ;;  %s173_s3 = inlined_call_operand.vmem [shape: bf16[16,96], index: 3, kind: output, shape index: {}]  }
   0x1   :  { %117 = vmatprep.subr.bf16.mxu0 %v130_v0  ;;  %v127_v1 = vld [vmem:[%s170_s1 + $0x8] sm:$0xff]   ;;  %121 = vmatprep.mubr.msk.bf16.mxu0 %vm131_vm0, %v130_v0  ;;  %v128_v2 = vld [vmem:[%s170_s1] sm:$0xff]  }
   0x2   :  { %118 = vmatpush3.bf16.msra.mxu0 %v127_v1  ;;  %v129_v3 = vld [vmem:[%s171_s0] sm:$0xff]  }
   0x3   :  { %119 = vmatprep.subr.bf16.mxu0 %v130_v0  ;;  %v105_v4 = vld [vmem:[%s172_s2] ss:$0 sm:$0xff] }
   0x6   :  { %120 = vmatpush3.bf16.msra.mxu0 %v128_v2 }
   0x9   :  { %122 = vmatmul.mubr.msk.bf16.vlgmr.msra.gmra.mxu0 %vm45_vm1, %v129_v3 }
  0xc9   :  { %v83_v5 = vpop.f32.mrf.mxu0 }
  0xca   :  { %v84_v6 = vadd.f32 %v105_v4, %v83_v5 }
  0xcb   :  { %v123_v7 = vpop.f32.mrf.mxu0 }
  0xcc   :  { %v112_v8 = vpack.c.bf16 %v84_v6, %v84_v6 }
  0xcd   :  { %v86_v9 = vpop.f32.mrf.mxu0 }
  0xce   :  { %99 = vst.msk [vmem:[%s173_s3] sm:$0xf] %vm98_vm2, %v112_v8  ;;  %v87_v10 = vadd.f32 %v105_v4, %v86_v9 }
  0xcf   :  { %v124_v11 = vpop.f32.mrf.mxu0 }
  0xd0   :  { %v113_v12 = vpack.c.bf16 %v87_v10, %v87_v10 }
  0xd2   :  { %100 = vst.msk [vmem:[%s173_s3 + $0x4] sm:$0xf] %vm98_vm2, %v113_v12 }

// kernel: _lambda_.15
= control target key start
LH: loop header
LB: loop body
LE: loop exit
PB: predicated region body
PF: predicated region fallthrough
CT: control target
= control target key end

     0   :  { %v200_v0 = vmov 0.0   ;;  %vm201_vm0 = vmmov 0   ;;  %vm54_vm1 = vcmask 261120   ;;  %vm158_vm2 = vcmask 257024   ;;  %s269_s1 = inlined_call_operand.vmem [shape: bf16[32,32], index: 1, kind: input, shape index: {}]   ;;  %s270_s0 = inlined_call_operand.vmem [shape: bf16[16,32], index: 0, kind: input, shape index: {}]   ;;  %s271_s3 = inlined_call_operand.vmem [shape: bf16[16,32], index: 3, kind: input, shape index: {}]   ;;  %s272_s2 = inlined_call_operand.vmem [shape: f32[1,32], index: 2, kind: input, shape index: {}]   ;;  %s273_s4 = inlined_call_operand.vmem [shape: f32[1,32], index: 4, kind: input, shape index: {}]   ;;  %s274_s5 = inlined_call_operand.vmem [shape: f32[1,32], index: 5, kind: input, shape index: {}]   ;;  %s275_s6 = inlined_call_operand.vmem [shape: bf16[16,32], index: 6, kind: output, shape index: {}]  }
   0x1   :  { %183 = vmatprep.subr.bf16.mxu0 %v200_v0  ;;  %v193_v1 = vld [vmem:[%s269_s1 + $0x8] sm:$0xff]   ;;  %187 = vmatprep.mubr.msk.bf16.mxu0 %vm201_vm0, %v200_v0  ;;  %v194_v2 = vld [vmem:[%s269_s1] sm:$0xff]  }
   0x2   :  { %184 = vmatpush3.bf16.msra.mxu0 %v193_v1  ;;  %v195_v3 = vld [vmem:[%s270_s0] sm:$0xff]  }
   0x3   :  { %185 = vmatprep.subr.bf16.mxu0 %v200_v0  ;;  %v177_v4 = vld [vmem:[%s271_s3] sm:$0xff]  }
   0x4   :  { %v165_v5 = vld [vmem:[%s272_s2] ss:$0 sm:$0xff]  ;;  %v178_v6 = vunpack.c.l.bf16 %v177_v4  ;;  %v179_v11 = vunpack.c.h.bf16 %v177_v4 }
   0x5   :  { %v170_v35 = vld [vmem:[%s273_s4] ss:$0 sm:$0xff] }
   0x6   :  { %186 = vmatpush3.bf16.msra.mxu0 %v194_v2  ;;  %v171_v37 = vld [vmem:[%s274_s5] ss:$0 sm:$0xff] }
   0x9   :  { %188 = vmatmul.mubr.msk.bf16.vlgmr.msra.gmra.mxu0 %vm54_vm1, %v195_v3 }
  0xc9   :  { %v92_v7 = vpop.f32.mrf.mxu0 }
  0xca   :  { %v93_v8 = vadd.f32 %v165_v5, %v92_v7 }
  0xcb   :  { %v189_v9 = vpop.f32.mrf.mxu0 }
  0xcc   :  { %v103_v10 = vadd.f32 %v178_v6, %v93_v8 }
  0xcd   :  { %v95_v12 = vpop.f32.mrf.mxu0 }
  0xce   :  { %v96_v13 = vadd.f32 %v165_v5, %v95_v12  ;;  %v107_v14 = vsel %vm54_vm1, %v103_v10, 0.0 }
  0xcf   :  { %108 = vadd.xlane.f32.xlu0 %v107_v14  ;;  %v190_v15 = vpop.f32.mrf.mxu0 }
  0xd0   :  { %v104_v16 = vadd.f32 %v179_v11, %v96_v13 }
  0xd2   :  { %v110_v17 = vsel %vm54_vm1, %v104_v16, 0.0 }
  0xd3   :  { %111 = vadd.xlane.f32.xlu0 %v110_v17 }
 0x158   :  { %v109_v18 = vpop.xlane.xlu0 %108 }
 0x159   :  { %v114_v19 = vmul.f32 0.03125, %v109_v18 }
 0x15b   :  { %v116_v20 = vsub.f32 %v103_v10, %v114_v19 }
 0x15c   :  { %v112_v21 = vpop.xlane.xlu0 %111 }
 0x15d   :  { %v115_v22 = vmul.f32 0.03125, %v112_v21  ;;  %v118_v23 = vmul.f32 %v116_v20, %v116_v20 }
 0x15f   :  { %v117_v24 = vsub.f32 %v104_v16, %v115_v22  ;;  %v120_v25 = vsel %vm54_vm1, %v118_v23, 0.0 }
 0x160   :  { %121 = vadd.xlane.f32.xlu1 %v120_v25 }
 0x161   :  { %v119_v26 = vmul.f32 %v117_v24, %v117_v24 }
 0x163   :  { %v123_v27 = vsel %vm54_vm1, %v119_v26, 0.0 }
 0x164   :  { %124 = vadd.xlane.f32.xlu1 %v123_v27 }
 0x1e9   :  { %v122_v28 = vpop.xlane.xlu1 %121 }
 0x1ea   :  { %v126_v29 = vmul.f32 0.03125, %v122_v28 }
 0x1ec   :  { %v128_v30 = vadd.f32 1e-12, %v126_v29 }
 0x1ed   :  { %v125_v31 = vpop.xlane.xlu1 %124 }
 0x1ee   :  { %196 = vrsqrt.f32 %v128_v30  ;;  %v127_v32 = vmul.f32 0.03125, %v125_v31 }
 0x1f0   :  { %v129_v33 = vadd.f32 1e-12, %v127_v32 }
 0x1f2   :  { %198 = vrsqrt.f32 %v129_v33 }
 0x1fb   :  { %v197_v34 = vpop.eup %196 }
 0x1fc   :  { %v132_v36 = vmul.f32 %v197_v34, %v116_v20 }
 0x1fe   :  { %v140_v38 = vmul.f32 %v170_v35, %v132_v36 }
 0x1ff   :  { %v199_v39 = vpop.eup %198 }
 0x200   :  { %v148_v40 = vadd.f32 %v171_v37, %v140_v38  ;;  %v133_v41 = vmul.f32 %v199_v39, %v117_v24 }
 0x202   :  { %v174_v42 = vpack.c.bf16 %v148_v40, %v148_v40  ;;  %v141_v43 = vmul.f32 %v170_v35, %v133_v41 }
 0x204   :  { %159 = vst.msk [vmem:[%s275_s6] sm:$0xf] %vm158_vm2, %v174_v42  ;;  %v149_v44 = vadd.f32 %v171_v37, %v141_v43 }
 0x206   :  { %v175_v45 = vpack.c.bf16 %v149_v44, %v149_v44 }
 0x208   :  { %160 = vst.msk [vmem:[%s275_s6 + $0x4] sm:$0xf] %vm158_vm2, %v175_v45 }

// kernel: _lambda_.14
= control target key start
LH: loop header
LB: loop body
LE: loop exit
PB: predicated region body
PF: predicated region fallthrough
CT: control target
= control target key end

     0   :  { %s931_s12 = smov 0   ;;  %s1039_s0 = inlined_call_operand.vmem [shape: bf16[2,8,96], index: 0, kind: input, shape index: {}]   ;;  %s1040_s1 = inlined_call_operand.vmem [shape: f32[2,8,1], index: 1, kind: input, shape index: {}]   ;;  %s1041_s2 = inlined_call_operand.vmem [shape: f32[2,1,8], index: 2, kind: input, shape index: {}]   ;;  %s1042_s3 = inlined_call_operand.vmem [shape: bf16[2,8,32], index: 3, kind: output, shape index: {}]  }
   0x1 LB: > { %s759_s13 = sadd.s32 4294967295, %s892_s12   ;;  %p763_p0 = scmp.ge.s32.totalorder %s892_s12, 1  ;;  %s892_s12 = sphi %s931_s12, %s13_s12  }
   0x2   : > { %p153_p1 = scmp.lt.s32.totalorder %s892_s12, 3 }
   0x4   : > { %p154_p2 = pnand %p763_p0, %p153_p1 }
   0x5   : > { %p182_p3 = scmp.lt.s32.totalorder (!%p154_p2), %s759_s13, 1  ;;  %s897_s22 = smov (!%p154_p2), 96  }
   0x6   : > { %157 = sbr.rel (%p154_p2) target bundleno = 1533 (0x5fd), region = 32  ;;  %s898_s26 = smov (!%p154_p2), 88  }
   0x7   : > { %s899_s27 = smov (!%p154_p2), 120   ;;  %s900_s28 = smov (!%p154_p2), 80  }
   0x8   : > { %s901_s29 = smov (!%p154_p2), 112   ;;  %s902_s30 = smov (!%p154_p2), 104  }
   0x9   : > { %s903_s4 = smov (!%p154_p2), 64   ;;  %s904_s5 = smov (!%p154_p2), 72  }
   0xa   : > { %s905_s6 = smov (!%p154_p2), 48   ;;  %s906_s7 = smov (!%p154_p2), 56  }
   0xb   : > { %v894_v0 = vmov 0.0   ;;  %vm895_vm0 = vmmov 0   ;;  %s1044_s13 = smov (!%p182_p3, %s759_s13), 1  ;;  %v896_v1 = vmov 0   ;;  %vm219_vm1 = vcmask 64512   ;;  %s907_s8 = smov 40  }
   0xc   : > { %795 = vmatprep.subr.bf16.mxu0 %v894_v0  ;;  %797 = vmatprep.mubr.msk.bf16.mxu0 %vm895_vm0, %v894_v0  ;;  %s764_s14 = sshll.u32 %s1044_s13, 2  ;;  %s765_s15 = sshll.u32 %s1044_s13, 3  ;;  %vm285_vm3 = vcmask 1043456   ;;  %vm678_vm4 = vcmask 130048   ;;  %vm680_vm5 = vcmask 195584   ;;  %vm683_vm6 = vcmask 257024  }
   0xd   : > { %801 = vmatprep.subr.bf16.mxu1 %v894_v0  ;;  %803 = vmatprep.mubr.msk.bf16.mxu1 %vm895_vm0, %v894_v0  ;;  %s185_s18 = scalar_lea.vmem %s1039_s0, %s764_s14  ;;  %s189_s21 = scalar_lea.vmem %s1040_s1, %s765_s15 }
   0xe   : > { %868 = vset.pattern.permute.xlu0 %v896_v1  ;;  %v198_v2 = vld [vmem:[%s185_s18] sm:$0xf]  ;;  %s192_s25 = scalar_lea.vmem %s1041_s2, %s1044_s13  ;;  %s908_s9 = smov 8  }
   0xf   : > { %v954_v3 = vcombine.low %v198_v2, %v198_v2  ;;  %v199_v4 = vld [vmem:[%s189_s21] sm:$0xff]  ;;  %s909_s10 = smov 16   ;;  %s910_s11 = smov 24  }
  0x10   : > { %v767_v7 = vld [vmem:[%s192_s25] ss:$0 sm:$0xff]  ;;  %s196_s17 = scalar_lea.vmem %s1042_s3, %s764_s14 }
  0x11   : > { %217 = vrot.lane.b32.xlu0 %v954_v3, %s897_s22 }
  0x15   : > { %203 = vperm.xlu0 %868, %v199_v4  }
  0x19   : > { %331 = vrot.lane.b32.xlu0 %v954_v3, %s898_s26 }
  0x1d   : > { %329 = vrot.lane.b32.xlu0 %v954_v3, %s899_s27 }
  0x21   : > { %443 = vrot.lane.b32.xlu0 %v954_v3, %s900_s28 }
  0x25   : > { %441 = vrot.lane.b32.xlu0 %v954_v3, %s901_s29 }
  0x29   : > { %553 = vrot.lane.b32.xlu0 %v954_v3, %s902_s30 }
  0x83   : > { %v218_v5 = vpop.permute.xlu0 %217 }
  0x84   : > { %v224_v6 = vsel %vm219_vm1, %v218_v5, 0 }
  0x85   : > { %796 = vmatpush3.bf16.xpose.msra.mxu0 %v224_v6 }
  0x86   : > { %813 = vmatprep.subr.bf16.mxu0 %v894_v0 }
  0x8c   : > { %798 = vmatmul.mubr.msk.bf16.vlgmr.msra.gmra.mxu0 %vm219_vm1, %v198_v2 }
  0x8d   : > { %815 = vmatprep.mubr.msk.bf16.mxu0 %vm895_vm0, %v894_v0 }
  0x90   : > { %v204_v8 = vpop.permute.xlu0 %203 }
  0x91   : > { %v969_v9 = vmul.f32 %v767_v7, %v204_v8 }
  0x93   : > { %vm213_vm2 = vcmp.eq.f32.partialorder %v969_v9, 0.0 }
  0x94   : > { %v332_v25 = vpop.permute.xlu0 %331 }
  0x95   : > { %v337_v29 = vsel %vm219_vm1, %v332_v25, 0 }
  0x98   : > { %v330_v28 = vpop.permute.xlu0 %329 }
  0x9c   : > { %v444_v31 = vpop.permute.xlu0 %443 }
  0x9d   : > { %v449_v32 = vsel %vm219_vm1, %v444_v31, 0 }
  0xa0   : > { %v442_v34 = vpop.permute.xlu0 %441 }
  0xa4   : > { %v554_v36 = vpop.permute.xlu0 %553 }
 0x14c   : > { %v260_v10 = vpop.f32.mrf.mxu0 }
 0x14d   : > { %v266_v11 = vmul.f32 0.35355338, %v260_v10 }
 0x14e   : > { %v799_v12 = vpop.f32.mrf.mxu0 }
 0x14f   : > { %v267_v13 = vsel %vm213_vm2, -1e+09, %v266_v11 }
 0x150   : > { %v263_v14 = vpop.f32.mrf.mxu0  ;;  %v268_v15 = vsel %vm219_vm1, %v267_v13, -inf }
 0x151   : > { %269 = vmax.xlane.f32.xlu1 %v268_v15 }
 0x152   : > { %v800_v16 = vpop.f32.mrf.mxu0 }
 0x1da   : > { %v270_v17 = vpop.xlane.xlu1 %269 }
 0x1db   : > { %v271_v18 = vsub.f32 %v267_v13, %v270_v17 }
 0x1dd   : > { %v272_v19 = vmul.f32 1.442695, %v271_v18 }
 0x1df   : > { %870 = vpow2.f32 %v272_v19 }
 0x1ec   : > { %v871_v20 = vpop.eup %870 }
 0x1ed   : > { %v274_v21 = vsel %vm219_vm1, %v871_v20, 0.0 }
 0x1ee   : > { %275 = vadd.xlane.f32.xlu1 %v274_v21 }
 0x1ff   : > { %280 = vrot.lane.b32.xlu1 %v954_v3, %s903_s4 }
 0x203   : > { %555 = vrot.lane.b32.xlu1 %v954_v3, %s904_s5 }
 0x277   : > { %v276_v22 = vpop.xlane.xlu1 %275 }
 0x278   : > { %872 = vrcp.f32 %v276_v22 }
 0x27b   : > { %v281_v23 = vpop.permute.xlu1 %280 }
 0x27c   : > { %v287_v24 = vsel %vm285_vm3, %v281_v23, 0 }
 0x27d   : > { %802 = vmatpush3.bf16.msra.mxu1 %v287_v24 }
 0x27e   : > { %807 = vmatprep.subr.bf16.mxu1 %v894_v0 }
 0x27f   : > { %v556_v33 = vpop.permute.xlu1 %555 }
 0x280   : > { %v561_v35 = vsel %vm219_vm1, %v556_v33, 0 }
 0x285   : > { %v873_v26 = vpop.eup %872 }
 0x286   : > { %v278_v27 = vmul.f32 %v873_v26, %v871_v20 }
 0x288   : > { %v279_v30 = vpack.c.bf16 %v278_v27, %v278_v27 }
 0x28a   : > { %804 = vmatmul.mubr.msk.bf16.vlgmr.msra.gmra.mxu1 %vm219_vm1, %v279_v30 }
 0x28b   : > { %808 = vmatpush3.bf16.xpose.msra.mxu1 %v337_v29  ;;  %809 = vmatprep.mubr.msk.bf16.mxu1 %vm895_vm0, %v894_v0 }
 0x28c   : > { %819 = vmatprep.subr.bf16.mxu1 %v894_v0 }
 0x292   : > { %810 = vmatmul.mubr.msk.bf16.vlgmr.msra.gmra.mxu1 %vm219_vm1, %v330_v28 }
 0x293   : > { %820 = vmatpush3.bf16.xpose.msra.mxu1 %v449_v32  ;;  %821 = vmatprep.mubr.msk.bf16.mxu1 %vm895_vm0, %v894_v0 }
 0x294   : > { %831 = vmatprep.subr.bf16.mxu1 %v894_v0 }
 0x29a   : > { %822 = vmatmul.mubr.msk.bf16.vlgmr.msra.gmra.mxu1 %vm219_vm1, %v442_v34 }
 0x29b   : > { %832 = vmatpush3.bf16.xpose.msra.mxu1 %v561_v35  ;;  %833 = vmatprep.mubr.msk.bf16.mxu1 %vm895_vm0, %v894_v0 }
 0x2a2   : > { %834 = vmatmul.mubr.msk.bf16.vlgmr.msra.gmra.mxu1 %vm219_vm1, %v554_v36 }
 0x34a   : > { %v1000_v37 = vpop.f32.mrf.mxu1 }
 0x34c   : > { %v805_v38 = vpop.f32.mrf.mxu1 }
 0x34e   : > { %v326_v39 = vpop.f32.mrf.mxu1 }
 0x350   : > { %v806_v40 = vpop.f32.mrf.mxu1 }
 0x352   : > { %v373_v41 = vpop.f32.mrf.mxu1 }
 0x353   : > { %v379_v42 = vmul.f32 0.35355338, %v373_v41 }
 0x354   : > { %v811_v43 = vpop.f32.mrf.mxu1 }
 0x355   : > { %v380_v44 = vsel %vm213_vm2, -1e+09, %v379_v42 }
 0x356   : > { %v376_v45 = vpop.f32.mrf.mxu1  ;;  %v381_v46 = vsel %vm219_vm1, %v380_v44, -inf }
 0x357   : > { %382 = vmax.xlane.f32.xlu1 %v381_v46 }
 0x358   : > { %v812_v47 = vpop.f32.mrf.mxu1 }
 0x35a   : > { %v485_v48 = vpop.f32.mrf.mxu1 }
 0x35b   : > { %v491_v49 = vmul.f32 0.35355338, %v485_v48 }
 0x35c   : > { %v823_v50 = vpop.f32.mrf.mxu1 }
 0x35d   : > { %v492_v51 = vsel %vm213_vm2, -1e+09, %v491_v49 }
 0x35e   : > { %v488_v52 = vpop.f32.mrf.mxu1  ;;  %v493_v53 = vsel %vm219_vm1, %v492_v51, -inf }
 0x35f   : > { %494 = vmax.xlane.f32.xlu0 %v493_v53 }
 0x360   : > { %v824_v54 = vpop.f32.mrf.mxu1 }
 0x362   : > { %v597_v55 = vpop.f32.mrf.mxu1 }
 0x363   : > { %v603_v56 = vmul.f32 0.35355338, %v597_v55 }
 0x364   : > { %v835_v57 = vpop.f32.mrf.mxu1 }
 0x365   : > { %v604_v58 = vsel %vm213_vm2, -1e+09, %v603_v56 }
 0x366   : > { %v605_v59 = vsel %vm219_vm1, %v604_v58, -inf  ;;  %v600_v60 = vpop.f32.mrf.mxu1 }
 0x367   : > { %606 = vmax.xlane.f32.xlu0 %v605_v59 }
 0x368   : > { %v836_v61 = vpop.f32.mrf.mxu1 }
 0x3e0   : > { %v383_v62 = vpop.xlane.xlu1 %382 }
 0x3e1   : > { %v384_v63 = vsub.f32 %v380_v44, %v383_v62 }
 0x3e3   : > { %v385_v1 = vmul.f32 1.442695, %v384_v63 }
 0x3e5   : > { %874 = vpow2.f32 %v385_v1 }
 0x3e8   : > { %v495_v2 = vpop.xlane.xlu0 %494 }
 0x3e9   : > { %v496_v4 = vsub.f32 %v492_v51, %v495_v2 }
 0x3eb   : > { %v497_v5 = vmul.f32 1.442695, %v496_v4 }
 0x3ed   : > { %876 = vpow2.f32 %v497_v5 }
 0x3f0   : > { %v607_v10 = vpop.xlane.xlu0 %606 }
 0x3f1   : > { %v608_v11 = vsub.f32 %v604_v58, %v607_v10 }
 0x3f2   : > { %v875_v6 = vpop.eup %874 }
 0x3f3   : > { %v387_v7 = vsel %vm219_vm1, %v875_v6, 0.0  ;;  %v609_v12 = vmul.f32 1.442695, %v608_v11 }
 0x3f4   : > { %388 = vadd.xlane.f32.xlu1 %v387_v7 }
 0x3f5   : > { %878 = vpow2.f32 %v609_v12 }
 0x3fa   : > { %v877_v8 = vpop.eup %876 }
 0x3fb   : > { %v499_v9 = vsel %vm219_vm1, %v877_v8, 0.0 }
 0x3fc   : > { %500 = vadd.xlane.f32.xlu0 %v499_v9 }
 0x402   : > { %v879_v13 = vpop.eup %878 }
 0x403   : > { %v611_v14 = vsel %vm219_vm1, %v879_v13, 0.0 }
 0x405   : > { %505 = vrot.lane.b32.xlu1 %v954_v3, %s905_s6 }
 0x412   : > { %393 = vrot.lane.b32.xlu0 %v954_v3, %s906_s7 }
 0x429   : > { %612 = vadd.xlane.f32.xlu1 %v611_v14 }
 0x43a   : > { %617 = vrot.lane.b32.xlu1 %v954_v3, %s907_s8 }
 0x47d   : > { %v389_v15 = vpop.xlane.xlu1 %388 }
 0x47e   : > { %880 = vrcp.f32 %v389_v15 }
 0x481   : > { %v506_v21 = vpop.permute.xlu1 %505 }
 0x482   : > { %v511_v23 = vsel %vm285_vm3, %v506_v21, 0 }
 0x485   : > { %v501_v16 = vpop.xlane.xlu0 %500 }
 0x486   : > { %882 = vrcp.f32 %v501_v16 }
 0x489   : > { %v394_v17 = vpop.permute.xlu0 %393 }
 0x48a   : > { %v399_v18 = vsel %vm285_vm3, %v394_v17, 0 }
 0x48b   : > { %v881_v19 = vpop.eup %880  ;;  %814 = vmatpush3.bf16.msra.mxu0 %v399_v18 }
 0x48c   : > { %825 = vmatprep.subr.bf16.mxu0 %v894_v0  ;;  %v391_v20 = vmul.f32 %v881_v19, %v875_v6 }
 0x48e   : > { %v392_v22 = vpack.c.bf16 %v391_v20, %v391_v20 }
 0x490   : > { %816 = vmatmul.mubr.msk.bf16.vlgmr.msra.gmra.mxu0 %vm219_vm1, %v392_v22 }
 0x491   : > { %826 = vmatpush3.bf16.msra.mxu0 %v511_v23  ;;  %827 = vmatprep.mubr.msk.bf16.mxu0 %vm895_vm0, %v894_v0 }
 0x492   : > { %837 = vmatprep.subr.bf16.mxu0 %v894_v0 }
 0x493   : > { %v883_v3 = vpop.eup %882 }
 0x494   : > { %v503_v24 = vmul.f32 %v883_v3, %v877_v8 }
 0x496   : > { %v504_v25 = vpack.c.bf16 %v503_v24, %v503_v24 }
 0x498   : > { %828 = vmatmul.mubr.msk.bf16.vlgmr.msra.gmra.mxu0 %vm219_vm1, %v504_v25 }
 0x499   : > { %839 = vmatprep.mubr.msk.bf16.mxu0 %vm895_vm0, %v894_v0 }
 0x4b2   : > { %v613_v26 = vpop.xlane.xlu1 %612 }
 0x4b3   : > { %884 = vrcp.f32 %v613_v26 }
 0x4b6   : > { %v618_v27 = vpop.permute.xlu1 %617 }
 0x4b7   : > { %v623_v28 = vsel %vm285_vm3, %v618_v27, 0 }
 0x4b8   : > { %838 = vmatpush3.bf16.msra.mxu0 %v623_v28 }
 0x4c0   : > { %v885_v29 = vpop.eup %884 }
 0x4c1   : > { %v615_v30 = vmul.f32 %v885_v29, %v879_v13 }
 0x4c3   : > { %v616_v31 = vpack.c.bf16 %v615_v30, %v615_v30 }
 0x4c5   : > { %840 = vmatmul.mubr.msk.bf16.vlgmr.msra.gmra.mxu0 %vm219_vm1, %v616_v31 }
 0x550   : > { %v435_v32 = vpop.f32.mrf.mxu0 }
 0x551   : > { %666 = vrot.lane.b32.xlu0 %v435_v32, %s908_s9 }
 0x552   : > { %v817_v33 = vpop.f32.mrf.mxu0 }
 0x554   : > { %v438_v34 = vpop.f32.mrf.mxu0 }
 0x556   : > { %v818_v35 = vpop.f32.mrf.mxu0 }
 0x558   : > { %v547_v36 = vpop.f32.mrf.mxu0 }
 0x559   : > { %670 = vrot.lane.b32.xlu1 %v547_v36, %s909_s10 }
 0x55a   : > { %v829_v0 = vpop.f32.mrf.mxu0 }
 0x55c   : > { %v550_v38 = vpop.f32.mrf.mxu0 }
 0x55e   : > { %v830_v39 = vpop.f32.mrf.mxu0 }
 0x585   : > { %v659_v40 = vpop.f32.mrf.mxu0 }
 0x586   : > { %674 = vrot.lane.b32.xlu0 %v659_v40, %s910_s11 }
 0x587   : > { %v841_v41 = vpop.f32.mrf.mxu0 }
 0x589   : > { %v662_v42 = vpop.f32.mrf.mxu0 }
 0x58b   : > { %v842_v43 = vpop.f32.mrf.mxu0 }
 0x5c3   : > { %v667_v44 = vpop.permute.xlu0 %666 }
 0x5c4   : > { %v677_v46 = vsel %vm219_vm1, %v1000_v37, %v667_v44 }
 0x5cb   : > { %v671_v45 = vpop.permute.xlu1 %670 }
 0x5cc   : > { %v679_v47 = vsel %vm678_vm4, %v677_v46, %v671_v45 }
 0x5f8   : > { %v675_v48 = vpop.permute.xlu0 %674 }
 0x5f9   : > { %v681_v49 = vsel %vm680_vm5, %v679_v47, %v675_v48 }
 0x5fa   : > { %v682_v50 = vpack.c.bf16 %v681_v49, %v681_v49 }
 0x5fc   : > { %684 = vst.msk [vmem:[%s196_s17] sm:$0xf] %vm683_vm6, %v682_v50 }
 0x5fd PF: > { %s13_s12 = sadd.s32 1, %s892_s12  }
 0x5fe   : > { %p10_p4 = scmp.ge.s32.totalorder %s13_s12, 4  }
 0x600   :  { %12 = sbr.rel (!%p10_p4) target bundleno = 1 (0x1), region = 68 }

// kernel: _lambda_.16
= control target key start
LH: loop header
LB: loop body
LE: loop exit
PB: predicated region body
PF: predicated region fallthrough
CT: control target
= control target key end

     0   :  { %v152_v0 = vmov 0.0   ;;  %vm153_vm0 = vmmov 0   ;;  %vm45_vm1 = vcmask 261120   ;;  %vm116_vm2 = vcmask 519168   ;;  %s192_s1 = inlined_call_operand.vmem [shape: bf16[32,64], index: 1, kind: input, shape index: {}]   ;;  %s193_s0 = inlined_call_operand.vmem [shape: bf16[16,32], index: 0, kind: input, shape index: {}]   ;;  %s194_s2 = inlined_call_operand.vmem [shape: f32[1,64], index: 2, kind: input, shape index: {}]   ;;  %s195_s3 = inlined_call_operand.vmem [shape: bf16[16,64], index: 3, kind: output, shape index: {}]  }
   0x1   :  { %135 = vmatprep.subr.bf16.mxu0 %v152_v0  ;;  %v145_v1 = vld [vmem:[%s192_s1 + $0x8] sm:$0xff]   ;;  %139 = vmatprep.mubr.msk.bf16.mxu0 %vm153_vm0, %v152_v0  ;;  %v146_v2 = vld [vmem:[%s192_s1] sm:$0xff]  }
   0x2   :  { %136 = vmatpush3.bf16.msra.mxu0 %v145_v1  ;;  %v147_v3 = vld [vmem:[%s193_s0] sm:$0xff]  }
   0x3   :  { %137 = vmatprep.subr.bf16.mxu0 %v152_v0  ;;  %v123_v4 = vld [vmem:[%s194_s2] ss:$0 sm:$0xff] }
   0x6   :  { %138 = vmatpush3.bf16.msra.mxu0 %v146_v2 }
   0x9   :  { %140 = vmatmul.mubr.msk.bf16.vlgmr.msra.gmra.mxu0 %vm45_vm1, %v147_v3 }
  0xc9   :  { %v83_v5 = vpop.f32.mrf.mxu0 }
  0xca   :  { %v84_v6 = vadd.f32 %v123_v4, %v83_v5 }
  0xcb   :  { %v141_v7 = vpop.f32.mrf.mxu0 }
  0xcc   :  { %v92_v8 = vmul.f32 0.044715, %v84_v6  ;;  %v90_v22 = vmul.f32 0.5, %v84_v6 }
  0xcd   :  { %v86_v9 = vpop.f32.mrf.mxu0 }
  0xce   :  { %v94_v10 = vmul.f32 %v92_v8, %v84_v6  ;;  %v87_v11 = vadd.f32 %v123_v4, %v86_v9 }
  0xcf   :  { %v142_v12 = vpop.f32.mrf.mxu0 }
  0xd0   :  { %v96_v13 = vmul.f32 %v94_v10, %v84_v6  ;;  %v93_v14 = vmul.f32 0.044715, %v87_v11  ;;  %v91_v27 = vmul.f32 0.5, %v87_v11 }
  0xd2   :  { %v98_v15 = vadd.f32 %v96_v13, %v84_v6  ;;  %v95_v16 = vmul.f32 %v93_v14, %v87_v11 }
  0xd4   :  { %v100_v17 = vmul.f32 0.7978846, %v98_v15  ;;  %v97_v18 = vmul.f32 %v95_v16, %v87_v11 }
  0xd6   :  { %148 = vtanh.f32 %v100_v17  ;;  %v99_v19 = vadd.f32 %v97_v18, %v87_v11 }
  0xd8   :  { %v101_v20 = vmul.f32 0.7978846, %v99_v19 }
  0xda   :  { %150 = vtanh.f32 %v101_v20 }
  0xe3   :  { %v149_v21 = vpop.eup %148 }
  0xe4   :  { %v104_v23 = vadd.f32 1.0, %v149_v21 }
  0xe6   :  { %v106_v24 = vmul.f32 %v104_v23, %v90_v22 }
  0xe7   :  { %v151_v25 = vpop.eup %150 }
  0xe8   :  { %v130_v26 = vpack.c.bf16 %v106_v24, %v106_v24  ;;  %v105_v28 = vadd.f32 1.0, %v151_v25 }
  0xea   :  { %117 = vst.msk [vmem:[%s195_s3] sm:$0xf] %vm116_vm2, %v130_v26  ;;  %v107_v29 = vmul.f32 %v105_v28, %v91_v27 }
  0xec   :  { %v131_v30 = vpack.c.bf16 %v107_v29, %v107_v29 }
  0xee   :  { %118 = vst.msk [vmem:[%s195_s3 + $0x4] sm:$0xf] %vm116_vm2, %v131_v30 }

// kernel: _lambda_.23
= control target key start
LH: loop header
LB: loop body
LE: loop exit
PB: predicated region body
PF: predicated region fallthrough
CT: control target
= control target key end

     0   :  { %v145_v1 = vmov 0.0   ;;  %vm146_vm0 = vmmov 0   ;;  %s183_s0 = inlined_call_operand.vmem [shape: bf16[2,32], index: 0, kind: input, shape index: {}]   ;;  %s184_s1 = inlined_call_operand.vmem [shape: bf16[32,32], index: 1, kind: input, shape index: {}]   ;;  %s185_s2 = inlined_call_operand.vmem [shape: f32[1,32], index: 2, kind: input, shape index: {}]   ;;  %s186_s3 = inlined_call_operand.hbm [shape: f32[2,32], index: 3, kind: output, shape index: {}]  }
   0x1   :  { %v119_v0 = vld [vmem:[%s184_s1 + $0x8] sm:$0xff]   ;;  %108 = vmatprep.subr.bf16.mxu0 %v145_v1  ;;  %v120_v2 = vld [vmem:[%s184_s1] sm:$0xff]   ;;  %112 = vmatprep.mubr.msk.bf16.mxu0 %vm146_vm0, %v145_v1 }
   0x2   :  { %109 = vmatpush3.bf16.msra.mxu0 %v119_v0 }
   0x3   :  { %110 = vmatprep.subr.bf16.mxu0 %v145_v1 }
   0x4   :  { %8 = vsyncpa [#allocation3], 0  ;;  %v16_v3 = vld [vmem:[%s183_s0] sm:$0x1]  ;;  %vm40_vm1 = vcmask 261120   ;;  %s147_s1 = smov [#allocation2]  }
   0x5   :  { %v101_v4 = vld [vmem:[%s185_s2] ss:$0 sm:$0xff]  ;;  %s93_s20 = sshll.u32 %s147_s1, 4  ;;  %vm85_vm2 = vcmask 254976   ;;  %s94_s20 = int_to_ptr.vmem [resolvable:$true] %s93_s20 }
   0x6   :  { %111 = vmatpush3.bf16.msra.mxu0 %v120_v2  ;;  %s123_s21 = scalar_lea.vmem %s94_s20, 32  ;;  %p128_p1 = scmp.lt.s32.totalorder %s94_s20, %s94_s20 }
   0x7   :  { %p124_p0 = scmp.ne.s32.totalorder %s94_s20, %s123_s21  ;;  %p129_p2 = scmp.lt.s32.totalorder %s123_s21, %s123_s21 }
   0x9   :  { %113 = vmatmul.mubr.msk.bf16.vlgmr.msra.gmra.mxu0 %vm40_vm1, %v16_v3  ;;  %p130_p3 = por %p129_p2, %p128_p1 }
   0xb   :  { %p131_p4 = pnand %p130_p3, %p124_p0 }
  0xc9   :  { %v78_v5 = vpop.f32.mrf.mxu0 }
  0xca   :  { %v79_v6 = vadd.f32 %v101_v4, %v78_v5 }
  0xcb   :  { %v114_v7 = vpop.f32.mrf.mxu0 }
  0xcc   :  { %121 = vtanh.f32 %v79_v6 }
  0xcd   :  { %v81_v8 = vpop.f32.mrf.mxu0 }
  0xcf   :  { %v115_v9 = vpop.f32.mrf.mxu0 }
  0xd9   :  { %v122_v10 = vpop.eup %121 }
  0xda   :  { %86 = vst.msk [vmem:[#allocation2] sm:$0x3] %vm85_vm2, %v122_v10 }
  0xdb   :  { %134 = shalt.err (!%p131_p4)
}
  0xdc   :  { %96 = dma.vmem_to_hbm [thread:$0]  %s94_s20, 32, %s186_s3, [#allocation3]  }
  0xdd   :  { %143 = dma.done.wait [#allocation3], 32  }
  0xde   :  { %144 = vsyncadd [#allocation3], 4294967264 }
  0xdf   :  { %100 = vsyncpa [#allocation3], 1 }

// kernel: _lambda_.17
= control target key start
LH: loop header
LB: loop body
LE: loop exit
PB: predicated region body
PF: predicated region fallthrough
CT: control target
= control target key end

     0   :  { %v227_v0 = vmov 0.0   ;;  %vm228_vm0 = vmmov 0   ;;  %vm70_vm1 = vcmask 523264   ;;  %vm123_vm2 = vcmask 261120   ;;  %s301_s1 = inlined_call_operand.vmem [shape: bf16[64,32], index: 1, kind: input, shape index: {}]   ;;  %s302_s0 = inlined_call_operand.vmem [shape: bf16[16,64], index: 0, kind: input, shape index: {}]   ;;  %s303_s3 = inlined_call_operand.vmem [shape: bf16[16,32], index: 3, kind: input, shape index: {}]   ;;  %s304_s2 = inlined_call_operand.vmem [shape: f32[1,32], index: 2, kind: input, shape index: {}]   ;;  %s305_s4 = inlined_call_operand.vmem [shape: f32[1,32], index: 4, kind: input, shape index: {}]   ;;  %s306_s5 = inlined_call_operand.vmem [shape: f32[1,32], index: 5, kind: input, shape index: {}]   ;;  %s307_s6 = inlined_call_operand.vmem [shape: bf16[16,32], index: 6, kind: output, shape index: {}]  }
   0x1   :  { %204 = vmatprep.subr.bf16.mxu0 %v227_v0  ;;  %v218_v1 = vld [vmem:[%s301_s1 + $0x18] sm:$0xff]   ;;  %212 = vmatprep.mubr.msk.bf16.mxu0 %vm228_vm0, %v227_v0  ;;  %v219_v2 = vld [vmem:[%s301_s1 + $0x10] sm:$0xff]   ;;  %v220_v3 = vld [vmem:[%s301_s1 + $0x8] sm:$0xff]   ;;  %vm175_vm3 = vcmask 257024  }
   0x2   :  { %205 = vmatpush3.bf16.msra.mxu0 %v218_v1  ;;  %v221_v4 = vld [vmem:[%s301_s1] sm:$0xff]  }
   0x3   :  { %206 = vmatprep.subr.bf16.mxu0 %v227_v0  ;;  %v222_v5 = vld [vmem:[%s302_s0] sm:$0xff]  }
   0x4   :  { %v196_v6 = vld [vmem:[%s303_s3] sm:$0xff]  }
   0x5   :  { %v182_v7 = vld [vmem:[%s304_s2] ss:$0 sm:$0xff]  ;;  %v197_v8 = vunpack.c.l.bf16 %v196_v6  ;;  %v198_v13 = vunpack.c.h.bf16 %v196_v6 }
   0x6   :  { %207 = vmatpush3.bf16.msra.mxu0 %v219_v2  ;;  %v189_v37 = vld [vmem:[%s305_s4] ss:$0 sm:$0xff] }
   0x7   :  { %208 = vmatprep.subr.bf16.mxu0 %v227_v0  ;;  %v190_v39 = vld [vmem:[%s306_s5] ss:$0 sm:$0xff] }
   0xa   :  { %209 = vmatpush3.bf16.msra.mxu0 %v220_v3 }
   0xb   :  { %210 = vmatprep.subr.bf16.mxu0 %v227_v0 }
   0xe   :  { %211 = vmatpush3.bf16.msra.mxu0 %v221_v4 }
  0x11   :  { %213 = vmatmul.mubr.msk.bf16.vlgmr.msra.gmra.mxu0 %vm70_vm1, %v222_v5 }
  0xd1   :  { %v108_v9 = vpop.f32.mrf.mxu0 }
  0xd2   :  { %v109_v10 = vadd.f32 %v182_v7, %v108_v9 }
  0xd3   :  { %v214_v11 = vpop.f32.mrf.mxu0 }
  0xd4   :  { %v119_v12 = vadd.f32 %v197_v8, %v109_v10 }
  0xd5   :  { %v111_v14 = vpop.f32.mrf.mxu0 }
  0xd6   :  { %v112_v15 = vadd.f32 %v182_v7, %v111_v14  ;;  %v124_v16 = vsel %vm123_vm2, %v119_v12, 0.0 }
  0xd7   :  { %125 = vadd.xlane.f32.xlu0 %v124_v16  ;;  %v215_v17 = vpop.f32.mrf.mxu0 }
  0xd8   :  { %v120_v18 = vadd.f32 %v198_v13, %v112_v15 }
  0xda   :  { %v127_v19 = vsel %vm123_vm2, %v120_v18, 0.0 }
  0xdb   :  { %128 = vadd.xlane.f32.xlu0 %v127_v19 }
 0x160   :  { %v126_v20 = vpop.xlane.xlu0 %125 }
 0x161   :  { %v131_v21 = vmul.f32 0.03125, %v126_v20 }
 0x163   :  { %v133_v22 = vsub.f32 %v119_v12, %v131_v21 }
 0x164   :  { %v129_v23 = vpop.xlane.xlu0 %128 }
 0x165   :  { %v132_v24 = vmul.f32 0.03125, %v129_v23  ;;  %v135_v25 = vmul.f32 %v133_v22, %v133_v22 }
 0x167   :  { %v134_v26 = vsub.f32 %v120_v18, %v132_v24  ;;  %v137_v27 = vsel %vm123_vm2, %v135_v25, 0.0 }
 0x168   :  { %138 = vadd.xlane.f32.xlu1 %v137_v27 }
 0x169   :  { %v136_v28 = vmul.f32 %v134_v26, %v134_v26 }
 0x16b   :  { %v140_v29 = vsel %vm123_vm2, %v136_v28, 0.0 }
 0x16c   :  { %141 = vadd.xlane.f32.xlu1 %v140_v29 }
 0x1f1   :  { %v139_v30 = vpop.xlane.xlu1 %138 }
 0x1f2   :  { %v143_v31 = vmul.f32 0.03125, %v139_v30 }
 0x1f4   :  { %v145_v32 = vadd.f32 1e-12, %v143_v31 }
 0x1f5   :  { %v142_v33 = vpop.xlane.xlu1 %141 }
 0x1f6   :  { %223 = vrsqrt.f32 %v145_v32  ;;  %v144_v34 = vmul.f32 0.03125, %v142_v33 }
 0x1f8   :  { %v146_v35 = vadd.f32 1e-12, %v144_v34 }
 0x1fa   :  { %225 = vrsqrt.f32 %v146_v35 }
 0x203   :  { %v224_v36 = vpop.eup %223 }
 0x204   :  { %v149_v38 = vmul.f32 %v224_v36, %v133_v22 }
 0x206   :  { %v157_v40 = vmul.f32 %v189_v37, %v149_v38 }
 0x207   :  { %v226_v41 = vpop.eup %225 }
 0x208   :  { %v165_v42 = vadd.f32 %v190_v39, %v157_v40  ;;  %v150_v43 = vmul.f32 %v226_v41, %v134_v26 }
 0x20a   :  { %v193_v44 = vpack.c.bf16 %v165_v42, %v165_v42  ;;  %v158_v45 = vmul.f32 %v189_v37, %v150_v43 }
 0x20c   :  { %176 = vst.msk [vmem:[%s307_s6] sm:$0xf] %vm175_vm3, %v193_v44  ;;  %v166_v46 = vadd.f32 %v190_v39, %v158_v45 }
 0x20e   :  { %v194_v47 = vpack.c.bf16 %v166_v46, %v166_v46 }
 0x210   :  { %177 = vst.msk [vmem:[%s307_s6 + $0x4] sm:$0xf] %vm175_vm3, %v194_v47 }

</bundles_post_ra>
